<compile_context>
chip_gen: v6e
topology: v6e:2x2x1
jax: 0.10.0
libtpu: 0.0.40
codegen_flags: <defaults>
</compile_context>

<pallas_src>
import functools

import jax
import jax.numpy as jnp
from jax.experimental import pallas as pl
from jax.experimental.pallas import tpu as pltpu


def _round_up(x, m):
    return (x + m - 1) // m * m


def _tpu_vmem_capacity_bytes():
    """Physical VMEM per core; falls back to the smallest (v7x) budget."""
    try:
        info = pltpu.get_tpu_info()
        cap = int(getattr(info, "vmem_capacity_bytes", 0))
        if cap > 0:
            return cap
    except Exception:
        pass
    return 64 * 1024 * 1024


def _step_vmem_bytes(TH, W, Cin, Cp):
    """Rough per-grid-step VMEM footprint (double-buffered I/O + temporaries)."""
    cin_lane = _round_up(Cin, 128)          # lane padding of the NHWC input
    w_sub = _round_up(W, 8)
    # kernel 1
    k1 = (2 * (TH * w_sub * cin_lane * 2            # x band (bf16)
               + 2 * w_sub * cin_lane * 2           # halo rows
               + TH * w_sub * Cp * 2                # h1 out (bf16)
               + 8 * Cp * 4                         # stats out
               + 9 * _round_up(Cin, 16) * Cp * 2)   # conv1 tap weights
          + TH * w_sub * Cp * 4                     # f32 accumulator
          + 2 * TH * w_sub * cin_lane * 2)          # shifted-slab temporaries
    # kernel 2
    k2 = (2 * (TH * w_sub * Cp * 2                  # h1 band (bf16)
               + 2 * w_sub * Cp * 2                 # halo rows
               + TH * w_sub * Cp * 2                # `before` out (bf16)
               + (TH // 2) * _round_up(W // 2, 8) * Cp * 2   # pooled out
               + 9 * Cp * Cp * 2)                   # conv2 tap weights
          + TH * w_sub * Cp * 4                     # f32 accumulator
          + 3 * TH * w_sub * Cp * 2)                # bn_relu / shifted temporaries
    return max(k1, k2)


def _pick_row_tile(N, H, W, Cin, Cp, budget_bytes):
    """Largest even row band dividing H that fits VMEM and feeds the pipeline."""
    cands = [th for th in range(H, 1, -1) if H % th == 0 and th % 2 == 0]
    fits = [th for th in cands if _step_vmem_bytes(th, W, Cin, Cp) <= budget_bytes]
    if not fits:
        return cands[-1]
    for th in fits:                       # descending: biggest fitting band first
        if N * (H // th) >= 8:            # enough steps for 2 TCs + pipeline warm-up
            return th
    return fits[-1]                       # small problem: maximize step count


# --------------------------------------------------------------------------
# In-kernel helpers
# --------------------------------------------------------------------------
def _shift_cols(s, dx, W):
    """Replicate-padded column shift: dx=0 -> col x-1, dx=1 -> x, dx=2 -> x+1."""
    if dx == 0:
        return jnp.concatenate([s[:, :1, :], s[:, :W - 1, :]], axis=1)
    if dx == 1:
        return s
    return jnp.concatenate([s[:, 1:, :], s[:, W - 1:, :]], axis=1)


# --------------------------------------------------------------------------
# Kernel 1: conv1 (+bias) with per-tile BatchNorm partial statistics
# --------------------------------------------------------------------------
def _conv1_stats_kernel(xt_ref, xm_ref, xb_ref, w_ref, b_ref, h1_ref, st_ref):
    TH, W, Cin = xm_ref.shape
    Cp = h1_ref.shape[-1]

    xt = xt_ref[...]          # (1, W, Cin)  top halo row (replicate-clamped)
    xm = xm_ref[...]          # (TH, W, Cin) row band
    xb = xb_ref[...]          # (1, W, Cin)  bottom halo row

    # Row-shifted slabs (replicate padding along H comes from the halo rows).
    slabs = (
        jnp.concatenate([xt, xm[:TH - 1]], axis=0),     # ky = 0  (row y-1)
        xm,                                             # ky = 1  (row y)
        jnp.concatenate([xm[1:], xb], axis=0),          # ky = 2  (row y+1)
    )

    # 9 per-tap accumulating matmuls: (TH*W, Cin) @ (Cin, Cp) -> f32 acc.
    # (No 9x-wide im2col patch: each shifted slab is only one tile in VMEM.)
    acc = jnp.zeros((TH * W, Cp), jnp.float32)
    for ky in range(3):
        s = slabs[ky]
        for kx in range(3):
            tap = _shift_cols(s, kx, W).reshape(TH * W, Cin)
            acc = acc + jnp.dot(tap, w_ref[ky * 3 + kx],
                                preferred_element_type=jnp.float32)
    acc = acc + b_ref[...]                              # conv bias, (1, Cp)

    # Single-pass BatchNorm partials (sum, sum of squares) for this tile.
    s1 = jnp.sum(acc, axis=0, keepdims=True)
    s2 = jnp.sum(acc * acc, axis=0, keepdims=True)
    st_ref[...] = jnp.concatenate([s1, s2], axis=0)     # (2, Cp)

    h1_ref[...] = acc.reshape(TH, W, Cp).astype(h1_ref.dtype)


# --------------------------------------------------------------------------
# Kernel 2: BN affine + ReLU + conv2 + ReLU + 2x2 max-pool (all fused)
# --------------------------------------------------------------------------
def _conv2_pool_kernel(ht_ref, hm_ref, hb_ref, w_ref, b_ref, sc_ref, sh_ref,
                       pool_ref, before_ref):
    TH, W, Cp = hm_ref.shape
    Hh, Wh = TH // 2, W // 2

    def bn_relu(raw):
        y = raw.astype(jnp.float32) * sc_ref[...] + sh_ref[...]
        return jnp.maximum(y, 0.0).astype(jnp.bfloat16)

    at = bn_relu(ht_ref[...])     # (1, W, Cp)
    am = bn_relu(hm_ref[...])     # (TH, W, Cp)
    ab = bn_relu(hb_ref[...])     # (1, W, Cp)

    slabs = (
        jnp.concatenate([at, am[:TH - 1]], axis=0),
        am,
        jnp.concatenate([am[1:], ab], axis=0),
    )

    # 9 per-tap accumulating matmuls (no im2col patch).
    acc = jnp.zeros((TH * W, Cp), jnp.float32)
    for ky in range(3):
        s = slabs[ky]
        for kx in range(3):
            tap = _shift_cols(s, kx, W).reshape(TH * W, Cp)
            acc = acc + jnp.dot(tap, w_ref[ky * 3 + kx],
                                preferred_element_type=jnp.float32)
    acc = acc + b_ref[...]
    h2 = jnp.maximum(acc, 0.0).reshape(TH, W, Cp)       # ReLU

    before_ref[...] = h2.astype(before_ref.dtype)       # bf16 writeback

    # 2x2 max-pool, stride 2, entirely in-register (no VMEM roundtrip).
    hw = jnp.max(h2.reshape(TH, Wh, 2, Cp), axis=2)     # pool along W
    pooled = jnp.max(hw.reshape(Hh, 2, Wh, Cp), axis=1) # pool along H
    pool_ref[...] = pooled.astype(pool_ref.dtype)


# --------------------------------------------------------------------------
# pallas_call wrappers
# --------------------------------------------------------------------------
def _run_conv1(x, w1k, b1k, TH, vmem_limit):
    N, H, W, Cin = x.shape
    Cp = w1k.shape[-1]
    nb = H // TH

    def top_map(n, i):
        return (n, jnp.maximum(i * TH - 1, 0), 0, 0)       # replicate clamp

    def bot_map(n, i):
        return (n, jnp.minimum(i * TH + TH, H - 1), 0, 0)  # replicate clamp

    # TODO(synk): single-buffer the constant weight/bias blocks
    # (pipeline_mode=pl.Buffered(1)) to save VMEM on v7x once broadly supported.
    return pl.pallas_call(
        _conv1_stats_kernel,
        grid=(N, nb),
        in_specs=[
            pl.BlockSpec((None, 1, W, Cin), top_map),
            pl.BlockSpec((None, TH, W, Cin), lambda n, i: (n, i, 0, 0)),
            pl.BlockSpec((None, 1, W, Cin), bot_map),
            pl.BlockSpec((9, Cin, Cp), lambda n, i: (0, 0, 0)),
            pl.BlockSpec((1, Cp), lambda n, i: (0, 0)),
        ],
        out_specs=(
            pl.BlockSpec((None, TH, W, Cp), lambda n, i: (n, i, 0, 0)),
            pl.BlockSpec((None, None, 2, Cp), lambda n, i: (n, i, 0, 0)),
        ),
        out_shape=(
            jax.ShapeDtypeStruct((N, H, W, Cp), jnp.bfloat16),
            jax.ShapeDtypeStruct((N, nb, 2, Cp), jnp.float32),
        ),
        compiler_params=pltpu.CompilerParams(
            dimension_semantics=("parallel", "parallel"),
            vmem_limit_bytes=vmem_limit,
        ),
    )(x, x, x, w1k, b1k)


def _run_conv2(h1, w2k, b2k, scale, shift, TH, vmem_limit):
    N, H, W, Cp = h1.shape
    nb = H // TH
    Hh, Wh = H // 2, W // 2

    def top_map(n, i):
        return (n, jnp.maximum(i * TH - 1, 0), 0, 0)

    def bot_map(n, i):
        return (n, jnp.minimum(i * TH + TH, H - 1), 0, 0)

    return pl.pallas_call(
        _conv2_pool_kernel,
        grid=(N, nb),
        in_specs=[
            pl.BlockSpec((None, 1, W, Cp), top_map),
            pl.BlockSpec((None, TH, W, Cp), lambda n, i: (n, i, 0, 0)),
            pl.BlockSpec((None, 1, W, Cp), bot_map),
            pl.BlockSpec((9, Cp, Cp), lambda n, i: (0, 0, 0)),
            pl.BlockSpec((1, Cp), lambda n, i: (0, 0)),
            pl.BlockSpec((1, Cp), lambda n, i: (0, 0)),
            pl.BlockSpec((1, Cp), lambda n, i: (0, 0)),
        ],
        out_specs=(
            pl.BlockSpec((None, TH // 2, Wh, Cp), lambda n, i: (n, i, 0, 0)),
            pl.BlockSpec((None, TH, W, Cp), lambda n, i: (n, i, 0, 0)),
        ),
        out_shape=(
            jax.ShapeDtypeStruct((N, Hh, Wh, Cp), jnp.bfloat16),   # pooled
            jax.ShapeDtypeStruct((N, H, W, Cp), jnp.bfloat16),     # before_pool
        ),
        compiler_params=pltpu.CompilerParams(
            dimension_semantics=("parallel", "parallel"),
            vmem_limit_bytes=vmem_limit,
        ),
    )(h1, h1, h1, w2k, b2k, scale, shift)


# --------------------------------------------------------------------------
# Parameters + forward
# --------------------------------------------------------------------------
def init_down_conv_params(key, in_channels, out_channels):
    k1, k2, k3, k4 = jax.random.split(key, 4)
    fan1 = float(in_channels * 9)
    fan2 = float(out_channels * 9)
    w1 = jax.random.uniform(k1, (out_channels, in_channels, 3, 3), jnp.float32,
                            -1.0, 1.0) / jnp.sqrt(fan1)
    b1 = jax.random.uniform(k2, (out_channels,), jnp.float32, -1.0, 1.0) / jnp.sqrt(fan1)
    w2 = jax.random.uniform(k3, (out_channels, out_channels, 3, 3), jnp.float32,
                            -1.0, 1.0) / jnp.sqrt(fan2)
    b2 = jax.random.uniform(k4, (out_channels,), jnp.float32, -1.0, 1.0) / jnp.sqrt(fan2)
    gamma = jnp.ones((out_channels,), jnp.float32)   # BatchNorm2d default init
    beta = jnp.zeros((out_channels,), jnp.float32)
    return dict(w1=w1, b1=b1, w2=w2, b2=b2, gamma=gamma, beta=beta)


@functools.partial(jax.jit, static_argnames=("pooling",))
def down_conv_forward(x_nchw, params, pooling=True):
    """Equivalent of DownConv.forward: returns (x, before_pool) in NCHW."""
    w1, b1 = params["w1"], params["b1"]
    w2, b2 = params["w2"], params["b2"]
    gamma, beta = params["gamma"], params["beta"]

    N, Cin, H, W = x_nchw.shape
    Cout = w1.shape[0]
    assert H % 2 == 0 and W % 2 == 0, "even spatial dims expected (MaxPool2d(2,2))"
    Cp = _round_up(Cout, 128)                 # lane-dense channel padding

    # Generation-aware VMEM budget and row-band size.
    vmem_cap = _tpu_vmem_capacity_bytes()
    vmem_limit = int(min(vmem_cap * 0.85, vmem_cap - 12 * 1024 * 1024))
    TH = _pick_row_tile(N, H, W, Cin, Cp, int(vmem_limit * 0.85))

    # Per-tap weight slices (ky*3+kx, cin, cout), channels padded to Cp, bf16.
    w1k = jnp.transpose(w1, (2, 3, 1, 0)).reshape(9, Cin, Cout)
    w1k = jnp.pad(w1k, ((0, 0), (0, 0), (0, Cp - Cout))).astype(jnp.bfloat16)
    b1k = jnp.pad(b1, (0, Cp - Cout)).reshape(1, Cp).astype(jnp.float32)

    w2k = jnp.transpose(w2, (2, 3, 1, 0))                       # (3,3,Cout,Cout)
    w2k = jnp.pad(w2k, ((0, 0), (0, 0), (0, Cp - Cout), (0, Cp - Cout)))
    w2k = w2k.reshape(9, Cp, Cp).astype(jnp.bfloat16)
    b2k = jnp.pad(b2, (0, Cp - Cout)).reshape(1, Cp).astype(jnp.float32)

    gamma_p = jnp.pad(gamma, (0, Cp - Cout)).astype(jnp.float32)
    beta_p = jnp.pad(beta, (0, Cp - Cout)).astype(jnp.float32)

    # TODO(synk): keep the surrounding UNet NHWC end-to-end to drop this
    # transpose (and the output ones below); NCHW kept here to mirror PyTorch.
    # TODO(synk): for Cin << 128 a W*Cin lane-dense input layout for kernel 1
    # would further shrink its VMEM/VPU footprint.
    x = jnp.transpose(x_nchw, (0, 2, 3, 1)).astype(jnp.bfloat16)  # NCHW -> NHWC

    # Kernel 1: conv1 (+bias) and per-tile BN partial statistics.
    h1_raw, stats = _run_conv1(x, w1k, b1k, TH, vmem_limit)

    # Global BatchNorm2d training-mode statistics (biased variance over N,H,W).
    count = float(N * H * W)
    s1 = jnp.sum(stats[:, :, 0, :], axis=(0, 1))
    s2 = jnp.sum(stats[:, :, 1, :], axis=(0, 1))
    mean = s1 / count
    var = jnp.maximum(s2 / count - mean * mean, 0.0)
    inv = jax.lax.rsqrt(var + 1e-5)
    scale = (gamma_p * inv).reshape(1, Cp)
    shift = (beta_p - mean * gamma_p * inv).reshape(1, Cp)
    # TODO(synk): running_mean/running_var buffer updates are not materialized.

    # Kernel 2: BN affine + ReLU + conv2 + ReLU + 2x2 max-pool.
    pooled, before = _run_conv2(h1_raw, w2k, b2k, scale, shift, TH, vmem_limit)

    out_dtype = x_nchw.dtype
    before_nchw = jnp.transpose(before[..., :Cout], (0, 3, 1, 2)).astype(out_dtype)
    if pooling:
        x_out = jnp.transpose(pooled[..., :Cout], (0, 3, 1, 2)).astype(out_dtype)
    else:
        x_out = before_nchw
    return x_out, before_nchw


# --------------------------------------------------------------------------
if __name__ == "__main__":
    key = jax.random.PRNGKey(0)
    kx, kp = jax.random.split(key)

    N, Cin, Cout, H, W = 2, 4, 8, 16, 16
    x = jax.random.normal(kx, (N, Cin, H, W), jnp.float32)
    params = init_down_conv_params(kp, Cin, Cout)

    x_out, before_pool = down_conv_forward(x, params, pooling=True)
    jax.block_until_ready((x_out, before_pool))

    assert x_out.shape == (N, Cout, H // 2, W // 2), x_out.shape
    assert before_pool.shape == (N, Cout, H, W), before_pool.shape
    assert bool(jnp.all(jnp.isfinite(x_out))) and bool(jnp.all(jnp.isfinite(before_pool)))
    print("KERNEL_OK")
</pallas_src>

<mosaic_0001>
module attributes {stable_mosaic.version = 11 : i64} {
  func.func @_conv1_stats_kernel(%arg0: i32, %arg1: i32, %arg2: memref<1x1x16x4xbf16, #tpu.memory_space<vmem>>, %arg3: memref<1x4x16x4xbf16, #tpu.memory_space<vmem>>, %arg4: memref<1x1x16x4xbf16, #tpu.memory_space<vmem>>, %arg5: memref<9x4x128xbf16, #tpu.memory_space<vmem>>, %arg6: memref<1x128xf32, #tpu.memory_space<vmem>>, %arg7: memref<1x4x16x128xbf16, #tpu.memory_space<vmem>>, %arg8: memref<1x1x2x128xf32, #tpu.memory_space<vmem>>) attributes {dimension_semantics = [#tpu.dimension_semantics<parallel>, #tpu.dimension_semantics<parallel>], iteration_bounds = array<i64: 2, 4>, scalar_prefetch = 0 : i64, scratch_operands = 0 : i64, tpu.core_type = #tpu.core_type<tc>, window_params = [{transform_indices = @transform_0, window_bounds = array<i64: 1, 1, 16, 4>}, {transform_indices = @transform_1, window_bounds = array<i64: 1, 4, 16, 4>}, {transform_indices = @transform_2, window_bounds = array<i64: 1, 1, 16, 4>}, {pipeline_mode = #tpu.pipeline_mode<synchronous>, transform_indices = @transform_3, window_bounds = array<i64: 9, 4, 128>}, {pipeline_mode = #tpu.pipeline_mode<synchronous>, transform_indices = @transform_4, window_bounds = array<i64: 1, 128>}, {transform_indices = @transform_5, window_bounds = array<i64: 1, 4, 16, 128>}, {transform_indices = @transform_6, window_bounds = array<i64: 1, 1, 2, 128>}]} {
    %c0 = arith.constant 0 : index
    %c0_0 = arith.constant 0 : index
    %c0_1 = arith.constant 0 : index
    %c0_2 = arith.constant 0 : index
    %0 = vector.load %arg2[%c0, %c0_0, %c0_1, %c0_2] : memref<1x1x16x4xbf16, #tpu.memory_space<vmem>>, vector<1x1x16x4xbf16>
    %1 = vector.shape_cast %0 : vector<1x1x16x4xbf16> to vector<1x16x4xbf16>
    %c0_3 = arith.constant 0 : index
    %c0_4 = arith.constant 0 : index
    %c0_5 = arith.constant 0 : index
    %c0_6 = arith.constant 0 : index
    %2 = vector.load %arg3[%c0_3, %c0_4, %c0_5, %c0_6] : memref<1x4x16x4xbf16, #tpu.memory_space<vmem>>, vector<1x4x16x4xbf16>
    %3 = vector.shape_cast %2 : vector<1x4x16x4xbf16> to vector<4x16x4xbf16>
    %c0_7 = arith.constant 0 : index
    %c0_8 = arith.constant 0 : index
    %c0_9 = arith.constant 0 : index
    %c0_10 = arith.constant 0 : index
    %4 = vector.load %arg4[%c0_7, %c0_8, %c0_9, %c0_10] : memref<1x1x16x4xbf16, #tpu.memory_space<vmem>>, vector<1x1x16x4xbf16>
    %5 = vector.shape_cast %4 : vector<1x1x16x4xbf16> to vector<1x16x4xbf16>
    %6 = vector.extract_strided_slice %3 {offsets = [0, 0, 0], sizes = [3, 16, 4], strides = [1, 1, 1]} : vector<4x16x4xbf16> to vector<3x16x4xbf16>
    %7 = tpu.concatenate %1, %6 in 0 : vector<1x16x4xbf16>, vector<3x16x4xbf16> -> vector<4x16x4xbf16>
    %8 = vector.extract_strided_slice %3 {offsets = [1, 0, 0], sizes = [3, 16, 4], strides = [1, 1, 1]} : vector<4x16x4xbf16> to vector<3x16x4xbf16>
    %9 = tpu.concatenate %8, %5 in 0 : vector<3x16x4xbf16>, vector<1x16x4xbf16> -> vector<4x16x4xbf16>
    %cst = arith.constant 0.000000e+00 : f32
    %10 = vector.broadcast %cst : f32 to vector<64x128xf32>
    %11 = vector.extract_strided_slice %7 {offsets = [0, 0, 0], sizes = [4, 1, 4], strides = [1, 1, 1]} : vector<4x16x4xbf16> to vector<4x1x4xbf16>
    %12 = vector.extract_strided_slice %7 {offsets = [0, 0, 0], sizes = [4, 15, 4], strides = [1, 1, 1]} : vector<4x16x4xbf16> to vector<4x15x4xbf16>
    %13 = tpu.concatenate %11, %12 in 1 : vector<4x1x4xbf16>, vector<4x15x4xbf16> -> vector<4x16x4xbf16>
    %14 = vector.shape_cast %13 : vector<4x16x4xbf16> to vector<64x4xbf16>
    %c0_11 = arith.constant 0 : index
    %c0_12 = arith.constant 0 : index
    %c0_13 = arith.constant 0 : index
    %15 = vector.load %arg5[%c0_11, %c0_12, %c0_13] : memref<9x4x128xbf16, #tpu.memory_space<vmem>>, vector<1x4x128xbf16>
    %16 = vector.shape_cast %15 : vector<1x4x128xbf16> to vector<4x128xbf16>
    %cst_14 = arith.constant dense<0.000000e+00> : vector<64x128xf32>
    %17 = tpu.matmul %14, %16, %cst_14 {dimension_numbers = #tpu.dot_dimension_numbers<[1], [0], [0], [1], [0, 0, 1, 1], [], []>} : vector<64x4xbf16>, vector<4x128xbf16>, vector<64x128xf32> -> vector<64x128xf32>
    %18 = arith.addf %10, %17 : vector<64x128xf32>
    %19 = vector.shape_cast %7 : vector<4x16x4xbf16> to vector<64x4xbf16>
    %c1 = arith.constant 1 : index
    %c0_15 = arith.constant 0 : index
    %c0_16 = arith.constant 0 : index
    %20 = vector.load %arg5[%c1, %c0_15, %c0_16] : memref<9x4x128xbf16, #tpu.memory_space<vmem>>, vector<1x4x128xbf16>
    %21 = vector.shape_cast %20 : vector<1x4x128xbf16> to vector<4x128xbf16>
    %cst_17 = arith.constant dense<0.000000e+00> : vector<64x128xf32>
    %22 = tpu.matmul %19, %21, %cst_17 {dimension_numbers = #tpu.dot_dimension_numbers<[1], [0], [0], [1], [0, 0, 1, 1], [], []>} : vector<64x4xbf16>, vector<4x128xbf16>, vector<64x128xf32> -> vector<64x128xf32>
    %23 = arith.addf %18, %22 : vector<64x128xf32>
    %24 = vector.extract_strided_slice %7 {offsets = [0, 1, 0], sizes = [4, 15, 4], strides = [1, 1, 1]} : vector<4x16x4xbf16> to vector<4x15x4xbf16>
    %25 = vector.extract_strided_slice %7 {offsets = [0, 15, 0], sizes = [4, 1, 4], strides = [1, 1, 1]} : vector<4x16x4xbf16> to vector<4x1x4xbf16>
    %26 = tpu.concatenate %24, %25 in 1 : vector<4x15x4xbf16>, vector<4x1x4xbf16> -> vector<4x16x4xbf16>
    %27 = vector.shape_cast %26 : vector<4x16x4xbf16> to vector<64x4xbf16>
    %c2 = arith.constant 2 : index
    %c0_18 = arith.constant 0 : index
    %c0_19 = arith.constant 0 : index
    %28 = vector.load %arg5[%c2, %c0_18, %c0_19] : memref<9x4x128xbf16, #tpu.memory_space<vmem>>, vector<1x4x128xbf16>
    %29 = vector.shape_cast %28 : vector<1x4x128xbf16> to vector<4x128xbf16>
    %cst_20 = arith.constant dense<0.000000e+00> : vector<64x128xf32>
    %30 = tpu.matmul %27, %29, %cst_20 {dimension_numbers = #tpu.dot_dimension_numbers<[1], [0], [0], [1], [0, 0, 1, 1], [], []>} : vector<64x4xbf16>, vector<4x128xbf16>, vector<64x128xf32> -> vector<64x128xf32>
    %31 = arith.addf %23, %30 : vector<64x128xf32>
    %32 = vector.extract_strided_slice %3 {offsets = [0, 0, 0], sizes = [4, 1, 4], strides = [1, 1, 1]} : vector<4x16x4xbf16> to vector<4x1x4xbf16>
    %33 = vector.extract_strided_slice %3 {offsets = [0, 0, 0], sizes = [4, 15, 4], strides = [1, 1, 1]} : vector<4x16x4xbf16> to vector<4x15x4xbf16>
    %34 = tpu.concatenate %32, %33 in 1 : vector<4x1x4xbf16>, vector<4x15x4xbf16> -> vector<4x16x4xbf16>
    %35 = vector.shape_cast %34 : vector<4x16x4xbf16> to vector<64x4xbf16>
    %c3 = arith.constant 3 : index
    %c0_21 = arith.constant 0 : index
    %c0_22 = arith.constant 0 : index
    %36 = vector.load %arg5[%c3, %c0_21, %c0_22] : memref<9x4x128xbf16, #tpu.memory_space<vmem>>, vector<1x4x128xbf16>
    %37 = vector.shape_cast %36 : vector<1x4x128xbf16> to vector<4x128xbf16>
    %cst_23 = arith.constant dense<0.000000e+00> : vector<64x128xf32>
    %38 = tpu.matmul %35, %37, %cst_23 {dimension_numbers = #tpu.dot_dimension_numbers<[1], [0], [0], [1], [0, 0, 1, 1], [], []>} : vector<64x4xbf16>, vector<4x128xbf16>, vector<64x128xf32> -> vector<64x128xf32>
    %39 = arith.addf %31, %38 : vector<64x128xf32>
    %40 = vector.shape_cast %3 : vector<4x16x4xbf16> to vector<64x4xbf16>
    %c4 = arith.constant 4 : index
    %c0_24 = arith.constant 0 : index
    %c0_25 = arith.constant 0 : index
    %41 = vector.load %arg5[%c4, %c0_24, %c0_25] : memref<9x4x128xbf16, #tpu.memory_space<vmem>>, vector<1x4x128xbf16>
    %42 = vector.shape_cast %41 : vector<1x4x128xbf16> to vector<4x128xbf16>
    %cst_26 = arith.constant dense<0.000000e+00> : vector<64x128xf32>
    %43 = tpu.matmul %40, %42, %cst_26 {dimension_numbers = #tpu.dot_dimension_numbers<[1], [0], [0], [1], [0, 0, 1, 1], [], []>} : vector<64x4xbf16>, vector<4x128xbf16>, vector<64x128xf32> -> vector<64x128xf32>
    %44 = arith.addf %39, %43 : vector<64x128xf32>
    %45 = vector.extract_strided_slice %3 {offsets = [0, 1, 0], sizes = [4, 15, 4], strides = [1, 1, 1]} : vector<4x16x4xbf16> to vector<4x15x4xbf16>
    %46 = vector.extract_strided_slice %3 {offsets = [0, 15, 0], sizes = [4, 1, 4], strides = [1, 1, 1]} : vector<4x16x4xbf16> to vector<4x1x4xbf16>
    %47 = tpu.concatenate %45, %46 in 1 : vector<4x15x4xbf16>, vector<4x1x4xbf16> -> vector<4x16x4xbf16>
    %48 = vector.shape_cast %47 : vector<4x16x4xbf16> to vector<64x4xbf16>
    %c5 = arith.constant 5 : index
    %c0_27 = arith.constant 0 : index
    %c0_28 = arith.constant 0 : index
    %49 = vector.load %arg5[%c5, %c0_27, %c0_28] : memref<9x4x128xbf16, #tpu.memory_space<vmem>>, vector<1x4x128xbf16>
    %50 = vector.shape_cast %49 : vector<1x4x128xbf16> to vector<4x128xbf16>
    %cst_29 = arith.constant dense<0.000000e+00> : vector<64x128xf32>
    %51 = tpu.matmul %48, %50, %cst_29 {dimension_numbers = #tpu.dot_dimension_numbers<[1], [0], [0], [1], [0, 0, 1, 1], [], []>} : vector<64x4xbf16>, vector<4x128xbf16>, vector<64x128xf32> -> vector<64x128xf32>
    %52 = arith.addf %44, %51 : vector<64x128xf32>
    %53 = vector.extract_strided_slice %9 {offsets = [0, 0, 0], sizes = [4, 1, 4], strides = [1, 1, 1]} : vector<4x16x4xbf16> to vector<4x1x4xbf16>
    %54 = vector.extract_strided_slice %9 {offsets = [0, 0, 0], sizes = [4, 15, 4], strides = [1, 1, 1]} : vector<4x16x4xbf16> to vector<4x15x4xbf16>
    %55 = tpu.concatenate %53, %54 in 1 : vector<4x1x4xbf16>, vector<4x15x4xbf16> -> vector<4x16x4xbf16>
    %56 = vector.shape_cast %55 : vector<4x16x4xbf16> to vector<64x4xbf16>
    %c6 = arith.constant 6 : index
    %c0_30 = arith.constant 0 : index
    %c0_31 = arith.constant 0 : index
    %57 = vector.load %arg5[%c6, %c0_30, %c0_31] : memref<9x4x128xbf16, #tpu.memory_space<vmem>>, vector<1x4x128xbf16>
    %58 = vector.shape_cast %57 : vector<1x4x128xbf16> to vector<4x128xbf16>
    %cst_32 = arith.constant dense<0.000000e+00> : vector<64x128xf32>
    %59 = tpu.matmul %56, %58, %cst_32 {dimension_numbers = #tpu.dot_dimension_numbers<[1], [0], [0], [1], [0, 0, 1, 1], [], []>} : vector<64x4xbf16>, vector<4x128xbf16>, vector<64x128xf32> -> vector<64x128xf32>
    %60 = arith.addf %52, %59 : vector<64x128xf32>
    %61 = vector.shape_cast %9 : vector<4x16x4xbf16> to vector<64x4xbf16>
    %c7 = arith.constant 7 : index
    %c0_33 = arith.constant 0 : index
    %c0_34 = arith.constant 0 : index
    %62 = vector.load %arg5[%c7, %c0_33, %c0_34] : memref<9x4x128xbf16, #tpu.memory_space<vmem>>, vector<1x4x128xbf16>
    %63 = vector.shape_cast %62 : vector<1x4x128xbf16> to vector<4x128xbf16>
    %cst_35 = arith.constant dense<0.000000e+00> : vector<64x128xf32>
    %64 = tpu.matmul %61, %63, %cst_35 {dimension_numbers = #tpu.dot_dimension_numbers<[1], [0], [0], [1], [0, 0, 1, 1], [], []>} : vector<64x4xbf16>, vector<4x128xbf16>, vector<64x128xf32> -> vector<64x128xf32>
    %65 = arith.addf %60, %64 : vector<64x128xf32>
    %66 = vector.extract_strided_slice %9 {offsets = [0, 1, 0], sizes = [4, 15, 4], strides = [1, 1, 1]} : vector<4x16x4xbf16> to vector<4x15x4xbf16>
    %67 = vector.extract_strided_slice %9 {offsets = [0, 15, 0], sizes = [4, 1, 4], strides = [1, 1, 1]} : vector<4x16x4xbf16> to vector<4x1x4xbf16>
    %68 = tpu.concatenate %66, %67 in 1 : vector<4x15x4xbf16>, vector<4x1x4xbf16> -> vector<4x16x4xbf16>
    %69 = vector.shape_cast %68 : vector<4x16x4xbf16> to vector<64x4xbf16>
    %c8 = arith.constant 8 : index
    %c0_36 = arith.constant 0 : index
    %c0_37 = arith.constant 0 : index
    %70 = vector.load %arg5[%c8, %c0_36, %c0_37] : memref<9x4x128xbf16, #tpu.memory_space<vmem>>, vector<1x4x128xbf16>
    %71 = vector.shape_cast %70 : vector<1x4x128xbf16> to vector<4x128xbf16>
    %cst_38 = arith.constant dense<0.000000e+00> : vector<64x128xf32>
    %72 = tpu.matmul %69, %71, %cst_38 {dimension_numbers = #tpu.dot_dimension_numbers<[1], [0], [0], [1], [0, 0, 1, 1], [], []>} : vector<64x4xbf16>, vector<4x128xbf16>, vector<64x128xf32> -> vector<64x128xf32>
    %73 = arith.addf %65, %72 : vector<64x128xf32>
    %c0_39 = arith.constant 0 : index
    %c0_40 = arith.constant 0 : index
    %74 = vector.load %arg6[%c0_39, %c0_40] : memref<1x128xf32, #tpu.memory_space<vmem>>, vector<1x128xf32>
    %75 = vector.broadcast %74 : vector<1x128xf32> to vector<64x128xf32>
    %76 = arith.addf %73, %75 : vector<64x128xf32>
    %cst_41 = arith.constant dense<0.000000e+00> : vector<128xf32>
    %77 = vector.multi_reduction <add>, %76, %cst_41 [0] : vector<64x128xf32> to vector<128xf32>
    %78 = vector.shape_cast %77 : vector<128xf32> to vector<1x128xf32>
    %79 = arith.mulf %76, %76 : vector<64x128xf32>
    %cst_42 = arith.constant dense<0.000000e+00> : vector<128xf32>
    %80 = vector.multi_reduction <add>, %79, %cst_42 [0] : vector<64x128xf32> to vector<128xf32>
    %81 = vector.shape_cast %80 : vector<128xf32> to vector<1x128xf32>
    %82 = tpu.concatenate %78, %81 in 0 : vector<1x128xf32>, vector<1x128xf32> -> vector<2x128xf32>
    %c0_43 = arith.constant 0 : index
    %c0_44 = arith.constant 0 : index
    %c0_45 = arith.constant 0 : index
    %c0_46 = arith.constant 0 : index
    %83 = vector.load %arg8[%c0_43, %c0_44, %c0_45, %c0_46] : memref<1x1x2x128xf32, #tpu.memory_space<vmem>>, vector<1x1x2x128xf32>
    %84 = vector.shape_cast %83 : vector<1x1x2x128xf32> to vector<2x128xf32>
    %85 = vector.shape_cast %82 : vector<2x128xf32> to vector<1x1x2x128xf32>
    tpu.vector_store %arg8[%c0_43, %c0_44, %c0_45, %c0_46], %85 {strides = array<i32>} : memref<1x1x2x128xf32, #tpu.memory_space<vmem>>, vector<1x1x2x128xf32>,
    %86 = vector.shape_cast %76 : vector<64x128xf32> to vector<4x16x128xf32>
    %87 = arith.truncf %86 : vector<4x16x128xf32> to vector<4x16x128xbf16>
    %c0_47 = arith.constant 0 : index
    %c0_48 = arith.constant 0 : index
    %c0_49 = arith.constant 0 : index
    %c0_50 = arith.constant 0 : index
    %88 = vector.load %arg7[%c0_47, %c0_48, %c0_49, %c0_50] : memref<1x4x16x128xbf16, #tpu.memory_space<vmem>>, vector<1x4x16x128xbf16>
    %89 = vector.shape_cast %88 : vector<1x4x16x128xbf16> to vector<4x16x128xbf16>
    %90 = vector.shape_cast %87 : vector<4x16x128xbf16> to vector<1x4x16x128xbf16>
    tpu.vector_store %arg7[%c0_47, %c0_48, %c0_49, %c0_50], %90 {strides = array<i32>} : memref<1x4x16x128xbf16, #tpu.memory_space<vmem>>, vector<1x4x16x128xbf16>,
    return
  }
  func.func @transform_0(%arg0: i32, %arg1: i32) -> (i32, i32, i32, i32) {
    %c4_i32 = arith.constant 4 : i32
    %0 = arith.muli %arg1, %c4_i32 : i32
    %c1_i32 = arith.constant 1 : i32
    %1 = arith.subi %0, %c1_i32 : i32
    %c0_i32 = arith.constant 0 : i32
    %2 = arith.maxsi %1, %c0_i32 : i32
    %c0_i32_0 = arith.constant 0 : i32
    %c0_i32_1 = arith.constant 0 : i32
    %c0_i32_2 = arith.constant 0 : i32
    return %arg0, %2, %c0_i32_0, %c0_i32_1 : i32, i32, i32, i32
  }
  func.func @transform_1(%arg0: i32, %arg1: i32) -> (i32, i32, i32, i32) {
    %c0_i32 = arith.constant 0 : i32
    %c0_i32_0 = arith.constant 0 : i32
    %c0_i32_1 = arith.constant 0 : i32
    return %arg0, %arg1, %c0_i32, %c0_i32_0 : i32, i32, i32, i32
  }
  func.func @transform_2(%arg0: i32, %arg1: i32) -> (i32, i32, i32, i32) {
    %c4_i32 = arith.constant 4 : i32
    %0 = arith.muli %arg1, %c4_i32 : i32
    %c4_i32_0 = arith.constant 4 : i32
    %1 = arith.addi %0, %c4_i32_0 : i32
    %c15_i32 = arith.constant 15 : i32
    %2 = arith.minsi %1, %c15_i32 : i32
    %c0_i32 = arith.constant 0 : i32
    %c0_i32_1 = arith.constant 0 : i32
    %c0_i32_2 = arith.constant 0 : i32
    return %arg0, %2, %c0_i32, %c0_i32_1 : i32, i32, i32, i32
  }
  func.func @transform_3(%arg0: i32, %arg1: i32) -> (i32, i32, i32) {
    %c0_i32 = arith.constant 0 : i32
    %c0_i32_0 = arith.constant 0 : i32
    %c0_i32_1 = arith.constant 0 : i32
    %c0_i32_2 = arith.constant 0 : i32
    return %c0_i32, %c0_i32_0, %c0_i32_1 : i32, i32, i32
  }
  func.func @transform_4(%arg0: i32, %arg1: i32) -> (i32, i32) {
    %c0_i32 = arith.constant 0 : i32
    %c0_i32_0 = arith.constant 0 : i32
    %c0_i32_1 = arith.constant 0 : i32
    return %c0_i32, %c0_i32_0 : i32, i32
  }
  func.func @transform_5(%arg0: i32, %arg1: i32) -> (i32, i32, i32, i32) {
    %c0_i32 = arith.constant 0 : i32
    %c0_i32_0 = arith.constant 0 : i32
    %c0_i32_1 = arith.constant 0 : i32
    return %arg0, %arg1, %c0_i32, %c0_i32_0 : i32, i32, i32, i32
  }
  func.func @transform_6(%arg0: i32, %arg1: i32) -> (i32, i32, i32, i32) {
    %c0_i32 = arith.constant 0 : i32
    %c0_i32_0 = arith.constant 0 : i32
    %c0_i32_1 = arith.constant 0 : i32
    return %arg0, %arg1, %c0_i32, %c0_i32_0 : i32, i32, i32, i32
  }
}

module attributes {stable_mosaic.version = 11 : i64} {
  func.func @_conv2_pool_kernel(%arg0: i32, %arg1: i32, %arg2: memref<1x1x16x128xbf16, #tpu.memory_space<vmem>>, %arg3: memref<1x4x16x128xbf16, #tpu.memory_space<vmem>>, %arg4: memref<1x1x16x128xbf16, #tpu.memory_space<vmem>>, %arg5: memref<9x128x128xbf16, #tpu.memory_space<vmem>>, %arg6: memref<1x128xf32, #tpu.memory_space<vmem>>, %arg7: memref<1x128xf32, #tpu.memory_space<vmem>>, %arg8: memref<1x128xf32, #tpu.memory_space<vmem>>, %arg9: memref<1x2x8x128xbf16, #tpu.memory_space<vmem>>, %arg10: memref<1x4x16x128xbf16, #tpu.memory_space<vmem>>) attributes {dimension_semantics = [#tpu.dimension_semantics<parallel>, #tpu.dimension_semantics<parallel>], iteration_bounds = array<i64: 2, 4>, scalar_prefetch = 0 : i64, scratch_operands = 0 : i64, tpu.core_type = #tpu.core_type<tc>, window_params = [{transform_indices = @transform_0, window_bounds = array<i64: 1, 1, 16, 128>}, {transform_indices = @transform_1, window_bounds = array<i64: 1, 4, 16, 128>}, {transform_indices = @transform_2, window_bounds = array<i64: 1, 1, 16, 128>}, {pipeline_mode = #tpu.pipeline_mode<synchronous>, transform_indices = @transform_3, window_bounds = array<i64: 9, 128, 128>}, {pipeline_mode = #tpu.pipeline_mode<synchronous>, transform_indices = @transform_4, window_bounds = array<i64: 1, 128>}, {pipeline_mode = #tpu.pipeline_mode<synchronous>, transform_indices = @transform_5, window_bounds = array<i64: 1, 128>}, {pipeline_mode = #tpu.pipeline_mode<synchronous>, transform_indices = @transform_6, window_bounds = array<i64: 1, 128>}, {transform_indices = @transform_7, window_bounds = array<i64: 1, 2, 8, 128>}, {transform_indices = @transform_8, window_bounds = array<i64: 1, 4, 16, 128>}]} {
    %c0 = arith.constant 0 : index
    %c0_0 = arith.constant 0 : index
    %c0_1 = arith.constant 0 : index
    %c0_2 = arith.constant 0 : index
    %0 = vector.load %arg2[%c0, %c0_0, %c0_1, %c0_2] : memref<1x1x16x128xbf16, #tpu.memory_space<vmem>>, vector<1x1x16x128xbf16>
    %1 = vector.shape_cast %0 : vector<1x1x16x128xbf16> to vector<1x16x128xbf16>
    %2 = arith.extf %1 : vector<1x16x128xbf16> to vector<1x16x128xf32>
    %c0_3 = arith.constant 0 : index
    %c0_4 = arith.constant 0 : index
    %3 = vector.load %arg7[%c0_3, %c0_4] : memref<1x128xf32, #tpu.memory_space<vmem>>, vector<1x128xf32>
    %4 = vector.shape_cast %3 : vector<1x128xf32> to vector<1x1x128xf32>
    %5 = vector.broadcast %4 : vector<1x1x128xf32> to vector<1x16x128xf32>
    %6 = arith.mulf %2, %5 : vector<1x16x128xf32>
    %c0_5 = arith.constant 0 : index
    %c0_6 = arith.constant 0 : index
    %7 = vector.load %arg8[%c0_5, %c0_6] : memref<1x128xf32, #tpu.memory_space<vmem>>, vector<1x128xf32>
    %8 = vector.shape_cast %7 : vector<1x128xf32> to vector<1x1x128xf32>
    %9 = vector.broadcast %8 : vector<1x1x128xf32> to vector<1x16x128xf32>
    %10 = arith.addf %6, %9 : vector<1x16x128xf32>
    %cst = arith.constant 0.000000e+00 : f32
    %11 = vector.broadcast %cst : f32 to vector<1x16x128xf32>
    %12 = arith.maximumf %10, %11 : vector<1x16x128xf32>
    %13 = arith.truncf %12 : vector<1x16x128xf32> to vector<1x16x128xbf16>
    %c0_7 = arith.constant 0 : index
    %c0_8 = arith.constant 0 : index
    %c0_9 = arith.constant 0 : index
    %c0_10 = arith.constant 0 : index
    %14 = vector.load %arg3[%c0_7, %c0_8, %c0_9, %c0_10] : memref<1x4x16x128xbf16, #tpu.memory_space<vmem>>, vector<1x4x16x128xbf16>
    %15 = vector.shape_cast %14 : vector<1x4x16x128xbf16> to vector<4x16x128xbf16>
    %16 = arith.extf %15 : vector<4x16x128xbf16> to vector<4x16x128xf32>
    %c0_11 = arith.constant 0 : index
    %c0_12 = arith.constant 0 : index
    %17 = vector.load %arg7[%c0_11, %c0_12] : memref<1x128xf32, #tpu.memory_space<vmem>>, vector<1x128xf32>
    %18 = vector.shape_cast %17 : vector<1x128xf32> to vector<1x1x128xf32>
    %19 = vector.broadcast %18 : vector<1x1x128xf32> to vector<4x16x128xf32>
    %20 = arith.mulf %16, %19 : vector<4x16x128xf32>
    %c0_13 = arith.constant 0 : index
    %c0_14 = arith.constant 0 : index
    %21 = vector.load %arg8[%c0_13, %c0_14] : memref<1x128xf32, #tpu.memory_space<vmem>>, vector<1x128xf32>
    %22 = vector.shape_cast %21 : vector<1x128xf32> to vector<1x1x128xf32>
    %23 = vector.broadcast %22 : vector<1x1x128xf32> to vector<4x16x128xf32>
    %24 = arith.addf %20, %23 : vector<4x16x128xf32>
    %cst_15 = arith.constant 0.000000e+00 : f32
    %25 = vector.broadcast %cst_15 : f32 to vector<4x16x128xf32>
    %26 = arith.maximumf %24, %25 : vector<4x16x128xf32>
    %27 = arith.truncf %26 : vector<4x16x128xf32> to vector<4x16x128xbf16>
    %c0_16 = arith.constant 0 : index
    %c0_17 = arith.constant 0 : index
    %c0_18 = arith.constant 0 : index
    %c0_19 = arith.constant 0 : index
    %28 = vector.load %arg4[%c0_16, %c0_17, %c0_18, %c0_19] : memref<1x1x16x128xbf16, #tpu.memory_space<vmem>>, vector<1x1x16x128xbf16>
    %29 = vector.shape_cast %28 : vector<1x1x16x128xbf16> to vector<1x16x128xbf16>
    %30 = arith.extf %29 : vector<1x16x128xbf16> to vector<1x16x128xf32>
    %c0_20 = arith.constant 0 : index
    %c0_21 = arith.constant 0 : index
    %31 = vector.load %arg7[%c0_20, %c0_21] : memref<1x128xf32, #tpu.memory_space<vmem>>, vector<1x128xf32>
    %32 = vector.shape_cast %31 : vector<1x128xf32> to vector<1x1x128xf32>
    %33 = vector.broadcast %32 : vector<1x1x128xf32> to vector<1x16x128xf32>
    %34 = arith.mulf %30, %33 : vector<1x16x128xf32>
    %c0_22 = arith.constant 0 : index
    %c0_23 = arith.constant 0 : index
    %35 = vector.load %arg8[%c0_22, %c0_23] : memref<1x128xf32, #tpu.memory_space<vmem>>, vector<1x128xf32>
    %36 = vector.shape_cast %35 : vector<1x128xf32> to vector<1x1x128xf32>
    %37 = vector.broadcast %36 : vector<1x1x128xf32> to vector<1x16x128xf32>
    %38 = arith.addf %34, %37 : vector<1x16x128xf32>
    %cst_24 = arith.constant 0.000000e+00 : f32
    %39 = vector.broadcast %cst_24 : f32 to vector<1x16x128xf32>
    %40 = arith.maximumf %38, %39 : vector<1x16x128xf32>
    %41 = arith.truncf %40 : vector<1x16x128xf32> to vector<1x16x128xbf16>
    %42 = vector.extract_strided_slice %27 {offsets = [0, 0, 0], sizes = [3, 16, 128], strides = [1, 1, 1]} : vector<4x16x128xbf16> to vector<3x16x128xbf16>
    %43 = tpu.concatenate %13, %42 in 0 : vector<1x16x128xbf16>, vector<3x16x128xbf16> -> vector<4x16x128xbf16>
    %44 = vector.extract_strided_slice %27 {offsets = [1, 0, 0], sizes = [3, 16, 128], strides = [1, 1, 1]} : vector<4x16x128xbf16> to vector<3x16x128xbf16>
    %45 = tpu.concatenate %44, %41 in 0 : vector<3x16x128xbf16>, vector<1x16x128xbf16> -> vector<4x16x128xbf16>
    %cst_25 = arith.constant 0.000000e+00 : f32
    %46 = vector.broadcast %cst_25 : f32 to vector<64x128xf32>
    %47 = vector.extract_strided_slice %43 {offsets = [0, 0, 0], sizes = [4, 1, 128], strides = [1, 1, 1]} : vector<4x16x128xbf16> to vector<4x1x128xbf16>
    %48 = vector.extract_strided_slice %43 {offsets = [0, 0, 0], sizes = [4, 15, 128], strides = [1, 1, 1]} : vector<4x16x128xbf16> to vector<4x15x128xbf16>
    %49 = tpu.concatenate %47, %48 in 1 : vector<4x1x128xbf16>, vector<4x15x128xbf16> -> vector<4x16x128xbf16>
    %50 = vector.shape_cast %49 : vector<4x16x128xbf16> to vector<64x128xbf16>
    %c0_26 = arith.constant 0 : index
    %c0_27 = arith.constant 0 : index
    %c0_28 = arith.constant 0 : index
    %51 = vector.load %arg5[%c0_26, %c0_27, %c0_28] : memref<9x128x128xbf16, #tpu.memory_space<vmem>>, vector<1x128x128xbf16>
    %52 = vector.shape_cast %51 : vector<1x128x128xbf16> to vector<128x128xbf16>
    %cst_29 = arith.constant dense<0.000000e+00> : vector<64x128xf32>
    %53 = tpu.matmul %50, %52, %cst_29 {dimension_numbers = #tpu.dot_dimension_numbers<[1], [0], [0], [1], [0, 0, 1, 1], [], []>} : vector<64x128xbf16>, vector<128x128xbf16>, vector<64x128xf32> -> vector<64x128xf32>
    %54 = arith.addf %46, %53 : vector<64x128xf32>
    %55 = vector.shape_cast %43 : vector<4x16x128xbf16> to vector<64x128xbf16>
    %c1 = arith.constant 1 : index
    %c0_30 = arith.constant 0 : index
    %c0_31 = arith.constant 0 : index
    %56 = vector.load %arg5[%c1, %c0_30, %c0_31] : memref<9x128x128xbf16, #tpu.memory_space<vmem>>, vector<1x128x128xbf16>
    %57 = vector.shape_cast %56 : vector<1x128x128xbf16> to vector<128x128xbf16>
    %cst_32 = arith.constant dense<0.000000e+00> : vector<64x128xf32>
    %58 = tpu.matmul %55, %57, %cst_32 {dimension_numbers = #tpu.dot_dimension_numbers<[1], [0], [0], [1], [0, 0, 1, 1], [], []>} : vector<64x128xbf16>, vector<128x128xbf16>, vector<64x128xf32> -> vector<64x128xf32>
    %59 = arith.addf %54, %58 : vector<64x128xf32>
    %60 = vector.extract_strided_slice %43 {offsets = [0, 1, 0], sizes = [4, 15, 128], strides = [1, 1, 1]} : vector<4x16x128xbf16> to vector<4x15x128xbf16>
    %61 = vector.extract_strided_slice %43 {offsets = [0, 15, 0], sizes = [4, 1, 128], strides = [1, 1, 1]} : vector<4x16x128xbf16> to vector<4x1x128xbf16>
    %62 = tpu.concatenate %60, %61 in 1 : vector<4x15x128xbf16>, vector<4x1x128xbf16> -> vector<4x16x128xbf16>
    %63 = vector.shape_cast %62 : vector<4x16x128xbf16> to vector<64x128xbf16>
    %c2 = arith.constant 2 : index
    %c0_33 = arith.constant 0 : index
    %c0_34 = arith.constant 0 : index
    %64 = vector.load %arg5[%c2, %c0_33, %c0_34] : memref<9x128x128xbf16, #tpu.memory_space<vmem>>, vector<1x128x128xbf16>
    %65 = vector.shape_cast %64 : vector<1x128x128xbf16> to vector<128x128xbf16>
    %cst_35 = arith.constant dense<0.000000e+00> : vector<64x128xf32>
    %66 = tpu.matmul %63, %65, %cst_35 {dimension_numbers = #tpu.dot_dimension_numbers<[1], [0], [0], [1], [0, 0, 1, 1], [], []>} : vector<64x128xbf16>, vector<128x128xbf16>, vector<64x128xf32> -> vector<64x128xf32>
    %67 = arith.addf %59, %66 : vector<64x128xf32>
    %68 = vector.extract_strided_slice %27 {offsets = [0, 0, 0], sizes = [4, 1, 128], strides = [1, 1, 1]} : vector<4x16x128xbf16> to vector<4x1x128xbf16>
    %69 = vector.extract_strided_slice %27 {offsets = [0, 0, 0], sizes = [4, 15, 128], strides = [1, 1, 1]} : vector<4x16x128xbf16> to vector<4x15x128xbf16>
    %70 = tpu.concatenate %68, %69 in 1 : vector<4x1x128xbf16>, vector<4x15x128xbf16> -> vector<4x16x128xbf16>
    %71 = vector.shape_cast %70 : vector<4x16x128xbf16> to vector<64x128xbf16>
    %c3 = arith.constant 3 : index
    %c0_36 = arith.constant 0 : index
    %c0_37 = arith.constant 0 : index
    %72 = vector.load %arg5[%c3, %c0_36, %c0_37] : memref<9x128x128xbf16, #tpu.memory_space<vmem>>, vector<1x128x128xbf16>
    %73 = vector.shape_cast %72 : vector<1x128x128xbf16> to vector<128x128xbf16>
    %cst_38 = arith.constant dense<0.000000e+00> : vector<64x128xf32>
    %74 = tpu.matmul %71, %73, %cst_38 {dimension_numbers = #tpu.dot_dimension_numbers<[1], [0], [0], [1], [0, 0, 1, 1], [], []>} : vector<64x128xbf16>, vector<128x128xbf16>, vector<64x128xf32> -> vector<64x128xf32>
    %75 = arith.addf %67, %74 : vector<64x128xf32>
    %76 = vector.shape_cast %27 : vector<4x16x128xbf16> to vector<64x128xbf16>
    %c4 = arith.constant 4 : index
    %c0_39 = arith.constant 0 : index
    %c0_40 = arith.constant 0 : index
    %77 = vector.load %arg5[%c4, %c0_39, %c0_40] : memref<9x128x128xbf16, #tpu.memory_space<vmem>>, vector<1x128x128xbf16>
    %78 = vector.shape_cast %77 : vector<1x128x128xbf16> to vector<128x128xbf16>
    %cst_41 = arith.constant dense<0.000000e+00> : vector<64x128xf32>
    %79 = tpu.matmul %76, %78, %cst_41 {dimension_numbers = #tpu.dot_dimension_numbers<[1], [0], [0], [1], [0, 0, 1, 1], [], []>} : vector<64x128xbf16>, vector<128x128xbf16>, vector<64x128xf32> -> vector<64x128xf32>
    %80 = arith.addf %75, %79 : vector<64x128xf32>
    %81 = vector.extract_strided_slice %27 {offsets = [0, 1, 0], sizes = [4, 15, 128], strides = [1, 1, 1]} : vector<4x16x128xbf16> to vector<4x15x128xbf16>
    %82 = vector.extract_strided_slice %27 {offsets = [0, 15, 0], sizes = [4, 1, 128], strides = [1, 1, 1]} : vector<4x16x128xbf16> to vector<4x1x128xbf16>
    %83 = tpu.concatenate %81, %82 in 1 : vector<4x15x128xbf16>, vector<4x1x128xbf16> -> vector<4x16x128xbf16>
    %84 = vector.shape_cast %83 : vector<4x16x128xbf16> to vector<64x128xbf16>
    %c5 = arith.constant 5 : index
    %c0_42 = arith.constant 0 : index
    %c0_43 = arith.constant 0 : index
    %85 = vector.load %arg5[%c5, %c0_42, %c0_43] : memref<9x128x128xbf16, #tpu.memory_space<vmem>>, vector<1x128x128xbf16>
    %86 = vector.shape_cast %85 : vector<1x128x128xbf16> to vector<128x128xbf16>
    %cst_44 = arith.constant dense<0.000000e+00> : vector<64x128xf32>
    %87 = tpu.matmul %84, %86, %cst_44 {dimension_numbers = #tpu.dot_dimension_numbers<[1], [0], [0], [1], [0, 0, 1, 1], [], []>} : vector<64x128xbf16>, vector<128x128xbf16>, vector<64x128xf32> -> vector<64x128xf32>
    %88 = arith.addf %80, %87 : vector<64x128xf32>
    %89 = vector.extract_strided_slice %45 {offsets = [0, 0, 0], sizes = [4, 1, 128], strides = [1, 1, 1]} : vector<4x16x128xbf16> to vector<4x1x128xbf16>
    %90 = vector.extract_strided_slice %45 {offsets = [0, 0, 0], sizes = [4, 15, 128], strides = [1, 1, 1]} : vector<4x16x128xbf16> to vector<4x15x128xbf16>
    %91 = tpu.concatenate %89, %90 in 1 : vector<4x1x128xbf16>, vector<4x15x128xbf16> -> vector<4x16x128xbf16>
    %92 = vector.shape_cast %91 : vector<4x16x128xbf16> to vector<64x128xbf16>
    %c6 = arith.constant 6 : index
    %c0_45 = arith.constant 0 : index
    %c0_46 = arith.constant 0 : index
    %93 = vector.load %arg5[%c6, %c0_45, %c0_46] : memref<9x128x128xbf16, #tpu.memory_space<vmem>>, vector<1x128x128xbf16>
    %94 = vector.shape_cast %93 : vector<1x128x128xbf16> to vector<128x128xbf16>
    %cst_47 = arith.constant dense<0.000000e+00> : vector<64x128xf32>
    %95 = tpu.matmul %92, %94, %cst_47 {dimension_numbers = #tpu.dot_dimension_numbers<[1], [0], [0], [1], [0, 0, 1, 1], [], []>} : vector<64x128xbf16>, vector<128x128xbf16>, vector<64x128xf32> -> vector<64x128xf32>
    %96 = arith.addf %88, %95 : vector<64x128xf32>
    %97 = vector.shape_cast %45 : vector<4x16x128xbf16> to vector<64x128xbf16>
    %c7 = arith.constant 7 : index
    %c0_48 = arith.constant 0 : index
    %c0_49 = arith.constant 0 : index
    %98 = vector.load %arg5[%c7, %c0_48, %c0_49] : memref<9x128x128xbf16, #tpu.memory_space<vmem>>, vector<1x128x128xbf16>
    %99 = vector.shape_cast %98 : vector<1x128x128xbf16> to vector<128x128xbf16>
    %cst_50 = arith.constant dense<0.000000e+00> : vector<64x128xf32>
    %100 = tpu.matmul %97, %99, %cst_50 {dimension_numbers = #tpu.dot_dimension_numbers<[1], [0], [0], [1], [0, 0, 1, 1], [], []>} : vector<64x128xbf16>, vector<128x128xbf16>, vector<64x128xf32> -> vector<64x128xf32>
    %101 = arith.addf %96, %100 : vector<64x128xf32>
    %102 = vector.extract_strided_slice %45 {offsets = [0, 1, 0], sizes = [4, 15, 128], strides = [1, 1, 1]} : vector<4x16x128xbf16> to vector<4x15x128xbf16>
    %103 = vector.extract_strided_slice %45 {offsets = [0, 15, 0], sizes = [4, 1, 128], strides = [1, 1, 1]} : vector<4x16x128xbf16> to vector<4x1x128xbf16>
    %104 = tpu.concatenate %102, %103 in 1 : vector<4x15x128xbf16>, vector<4x1x128xbf16> -> vector<4x16x128xbf16>
    %105 = vector.shape_cast %104 : vector<4x16x128xbf16> to vector<64x128xbf16>
    %c8 = arith.constant 8 : index
    %c0_51 = arith.constant 0 : index
    %c0_52 = arith.constant 0 : index
    %106 = vector.load %arg5[%c8, %c0_51, %c0_52] : memref<9x128x128xbf16, #tpu.memory_space<vmem>>, vector<1x128x128xbf16>
    %107 = vector.shape_cast %106 : vector<1x128x128xbf16> to vector<128x128xbf16>
    %cst_53 = arith.constant dense<0.000000e+00> : vector<64x128xf32>
    %108 = tpu.matmul %105, %107, %cst_53 {dimension_numbers = #tpu.dot_dimension_numbers<[1], [0], [0], [1], [0, 0, 1, 1], [], []>} : vector<64x128xbf16>, vector<128x128xbf16>, vector<64x128xf32> -> vector<64x128xf32>
    %109 = arith.addf %101, %108 : vector<64x128xf32>
    %c0_54 = arith.constant 0 : index
    %c0_55 = arith.constant 0 : index
    %110 = vector.load %arg6[%c0_54, %c0_55] : memref<1x128xf32, #tpu.memory_space<vmem>>, vector<1x128xf32>
    %111 = vector.broadcast %110 : vector<1x128xf32> to vector<64x128xf32>
    %112 = arith.addf %109, %111 : vector<64x128xf32>
    %cst_56 = arith.constant 0.000000e+00 : f32
    %113 = vector.broadcast %cst_56 : f32 to vector<64x128xf32>
    %114 = arith.maximumf %112, %113 : vector<64x128xf32>
    %115 = vector.shape_cast %114 : vector<64x128xf32> to vector<4x16x128xf32>
    %116 = arith.truncf %115 : vector<4x16x128xf32> to vector<4x16x128xbf16>
    %c0_57 = arith.constant 0 : index
    %c0_58 = arith.constant 0 : index
    %c0_59 = arith.constant 0 : index
    %c0_60 = arith.constant 0 : index
    %117 = vector.load %arg10[%c0_57, %c0_58, %c0_59, %c0_60] : memref<1x4x16x128xbf16, #tpu.memory_space<vmem>>, vector<1x4x16x128xbf16>
    %118 = vector.shape_cast %117 : vector<1x4x16x128xbf16> to vector<4x16x128xbf16>
    %119 = vector.shape_cast %116 : vector<4x16x128xbf16> to vector<1x4x16x128xbf16>
    tpu.vector_store %arg10[%c0_57, %c0_58, %c0_59, %c0_60], %119 {strides = array<i32>} : memref<1x4x16x128xbf16, #tpu.memory_space<vmem>>, vector<1x4x16x128xbf16>,
    %120 = vector.shape_cast %115 : vector<4x16x128xf32> to vector<4x8x2x128xf32>
    %cst_61 = arith.constant dense<0xFF800000> : vector<4x8x128xf32>
    %121 = vector.multi_reduction <maximumf>, %120, %cst_61 [2] : vector<4x8x2x128xf32> to vector<4x8x128xf32>
    %122 = vector.shape_cast %121 : vector<4x8x128xf32> to vector<2x2x8x128xf32>
    %cst_62 = arith.constant dense<0xFF800000> : vector<2x8x128xf32>
    %123 = vector.multi_reduction <maximumf>, %122, %cst_62 [1] : vector<2x2x8x128xf32> to vector<2x8x128xf32>
    %124 = arith.truncf %123 : vector<2x8x128xf32> to vector<2x8x128xbf16>
    %c0_63 = arith.constant 0 : index
    %c0_64 = arith.constant 0 : index
    %c0_65 = arith.constant 0 : index
    %c0_66 = arith.constant 0 : index
    %125 = vector.load %arg9[%c0_63, %c0_64, %c0_65, %c0_66] : memref<1x2x8x128xbf16, #tpu.memory_space<vmem>>, vector<1x2x8x128xbf16>
    %126 = vector.shape_cast %125 : vector<1x2x8x128xbf16> to vector<2x8x128xbf16>
    %127 = vector.shape_cast %124 : vector<2x8x128xbf16> to vector<1x2x8x128xbf16>
    tpu.vector_store %arg9[%c0_63, %c0_64, %c0_65, %c0_66], %127 {strides = array<i32>} : memref<1x2x8x128xbf16, #tpu.memory_space<vmem>>, vector<1x2x8x128xbf16>,
    return
  }
  func.func @transform_0(%arg0: i32, %arg1: i32) -> (i32, i32, i32, i32) {
    %c4_i32 = arith.constant 4 : i32
    %0 = arith.muli %arg1, %c4_i32 : i32
    %c1_i32 = arith.constant 1 : i32
    %1 = arith.subi %0, %c1_i32 : i32
    %c0_i32 = arith.constant 0 : i32
    %2 = arith.maxsi %1, %c0_i32 : i32
    %c0_i32_0 = arith.constant 0 : i32
    %c0_i32_1 = arith.constant 0 : i32
    %c0_i32_2 = arith.constant 0 : i32
    return %arg0, %2, %c0_i32_0, %c0_i32_1 : i32, i32, i32, i32
  }
  func.func @transform_1(%arg0: i32, %arg1: i32) -> (i32, i32, i32, i32) {
    %c0_i32 = arith.constant 0 : i32
    %c0_i32_0 = arith.constant 0 : i32
    %c0_i32_1 = arith.constant 0 : i32
    return %arg0, %arg1, %c0_i32, %c0_i32_0 : i32, i32, i32, i32
  }
  func.func @transform_2(%arg0: i32, %arg1: i32) -> (i32, i32, i32, i32) {
    %c4_i32 = arith.constant 4 : i32
    %0 = arith.muli %arg1, %c4_i32 : i32
    %c4_i32_0 = arith.constant 4 : i32
    %1 = arith.addi %0, %c4_i32_0 : i32
    %c15_i32 = arith.constant 15 : i32
    %2 = arith.minsi %1, %c15_i32 : i32
    %c0_i32 = arith.constant 0 : i32
    %c0_i32_1 = arith.constant 0 : i32
    %c0_i32_2 = arith.constant 0 : i32
    return %arg0, %2, %c0_i32, %c0_i32_1 : i32, i32, i32, i32
  }
  func.func @transform_3(%arg0: i32, %arg1: i32) -> (i32, i32, i32) {
    %c0_i32 = arith.constant 0 : i32
    %c0_i32_0 = arith.constant 0 : i32
    %c0_i32_1 = arith.constant 0 : i32
    %c0_i32_2 = arith.constant 0 : i32
    return %c0_i32, %c0_i32_0, %c0_i32_1 : i32, i32, i32
  }
  func.func @transform_4(%arg0: i32, %arg1: i32) -> (i32, i32) {
    %c0_i32 = arith.constant 0 : i32
    %c0_i32_0 = arith.constant 0 : i32
    %c0_i32_1 = arith.constant 0 : i32
    return %c0_i32, %c0_i32_0 : i32, i32
  }
  func.func @transform_5(%arg0: i32, %arg1: i32) -> (i32, i32) {
    %c0_i32 = arith.constant 0 : i32
    %c0_i32_0 = arith.constant 0 : i32
    %c0_i32_1 = arith.constant 0 : i32
    return %c0_i32, %c0_i32_0 : i32, i32
  }
  func.func @transform_6(%arg0: i32, %arg1: i32) -> (i32, i32) {
    %c0_i32 = arith.constant 0 : i32
    %c0_i32_0 = arith.constant 0 : i32
    %c0_i32_1 = arith.constant 0 : i32
    return %c0_i32, %c0_i32_0 : i32, i32
  }
  func.func @transform_7(%arg0: i32, %arg1: i32) -> (i32, i32, i32, i32) {
    %c0_i32 = arith.constant 0 : i32
    %c0_i32_0 = arith.constant 0 : i32
    %c0_i32_1 = arith.constant 0 : i32
    return %arg0, %arg1, %c0_i32, %c0_i32_0 : i32, i32, i32, i32
  }
  func.func @transform_8(%arg0: i32, %arg1: i32) -> (i32, i32, i32, i32) {
    %c0_i32 = arith.constant 0 : i32
    %c0_i32_0 = arith.constant 0 : i32
    %c0_i32_1 = arith.constant 0 : i32
    return %arg0, %arg1, %c0_i32, %c0_i32_0 : i32, i32, i32, i32
  }
}

</mosaic_0001>

<bundles_post_ra>
// kernel: down_conv_forward.2
= control target key start
LH: loop header
LB: loop body
LE: loop exit
PB: predicated region body
PF: predicated region fallthrough
CT: control target
= control target key end

     0   :  { %s2007_s21 = smov 0   ;;  %s2009_s22 = smov 0   ;;  %s2302_s0 = inlined_call_operand.vmem [shape: bf16[2,16,16,4], index: 0, kind: input, shape index: {}, may-alias: {0,1,2}]   ;;  %s2303_s1 = inlined_call_operand.vmem [shape: bf16[2,16,16,4], index: 1, kind: input, shape index: {}, may-alias: {0,1,2}]   ;;  %s2304_s2 = inlined_call_operand.vmem [shape: bf16[2,16,16,4], index: 2, kind: input, shape index: {}, may-alias: {0,1,2}]   ;;  %s2305_s3 = inlined_call_operand.vmem [shape: bf16[9,4,128], index: 3, kind: input, shape index: {}]   ;;  %s2306_s4 = inlined_call_operand.vmem [shape: f32[1,128], index: 4, kind: input, shape index: {}]   ;;  %s2307_s5 = inlined_call_operand.vmem [shape: bf16[2,16,16,128], index: 5, kind: output, shape index: {0}]   ;;  %s2308_s6 = inlined_call_operand.vmem [shape: f32[2,4,2,128], index: 6, kind: output, shape index: {1}]  }
   0x1   :  { %s2011_s23 = smov 0   ;;  %s2013_s24 = smov 0  }
   0x2   :  { %s2015_s25 = smov 0  }
   0x3 LB: > { %s26_s26 = sadd.s32 1, %s1962_s23  ;;  %s29_s27 = sadd.s32 1, %s1966_s24  ;;  %s1970_s25 = sphi %s2015_s25, %s17_s25   ;;  %s1966_s24 = sphi %s2013_s24, %s2317_s24   ;;  %s1962_s23 = sphi %s2011_s23, %s2316_s23   ;;  %s1958_s22 = sphi %s2009_s22, %s2315_s22   ;;  %s1954_s21 = sphi %s2007_s21, %s2314_s21  }
   0x4   : > { %p27_p0 = scmp.ge.s32.totalorder %s26_s26, 4  ;;  %p1605_p1 = scmp.ge.s32.totalorder %s1970_s25, 1 }
   0x5   : > { %p303_p2 = scmp.lt.s32.totalorder %s1970_s25, 9 }
   0x6   : > { %s2319_s26 = smov (%p27_p0, %s26_s26), 0  ;;  %s2321_s27 = smov (!%p27_p0, %s29_s27), %s1966_s24 }
   0x7   : > { %p304_p3 = pnand %p1605_p1, %p303_p2  ;;  %p31_p4 = scmp.ge.s32.totalorder %s2321_s27, 2 }
   0x8   : > { %s2043_s30 = sshll.u32 (!%p304_p3), %s1954_s21, 2  ;;  %p381_p5 = scmp.lt.s32.totalorder (!%p304_p3), %s1958_s22, 1 }
   0x9   : > { %s2323_s27 = smov (%p31_p4, %s2321_s27), 0  ;;  %307 = sbr.rel (%p304_p3) target bundleno = 317 (0x13d), region = 40 }
   0xa   : > { %p397_p6 = scmp.lt.s32.totalorder (!%p304_p3), %s2043_s30, 15  ;;  %s1607_s9 = sadd.s32 (!%p304_p3), 4294967295, %s2043_s30 }
   0xb   : > { %p379_p7 = scmp.gt.s32.totalorder (!%p304_p3), %s1607_s9, 0  ;;  %p1608_p8 = scmp.lt.s32.totalorder (!%p304_p3), %s1607_s9, 15 }
   0xc   : > { %s406_s17 = sadd.s32 (!%p304_p3), 4, %s2043_s30  ;;  %p435_p10 = scmp.lt.s32.totalorder (!%p304_p3), %s1954_s21, 3 }
   0xd   : > { %p2141_p9 = scmp.lt.s32.totalorder (!%p304_p3), %s406_s17, 15 }
   0xe   : > { %v1637_v0 = vld [vmem:[%s2305_s3 + $0x2] sm:$0x3]  ;;  %vm525_vm0 = vcmask 1041408   ;;  %v513_v2 = vld [vmem:[%s2305_s3] sm:$0x3]  ;;  %s2325_s22 = smov (!%p381_p5, %s1958_s22), 1 }
   0xf   : > { %1871 = vmatprep.subr.msk.bf16.mxu1 %vm525_vm0, %v1637_v0  ;;  %v527_v1 = vsel %vm525_vm0, %v1637_v0, 0  ;;  %1870 = vmatprep.subr.msk.bf16.mxu0 %vm525_vm0, %v1637_v0  ;;  %v1650_v3 = vld [vmem:[%s2305_s3 + $0x4] sm:$0x3]  ;;  %s398_s12 = scalar_select %p397_p6, %s2043_s30, 15  ;;  %vm516_vm1 = vcmask 31744   ;;  %v607_v11 = vsel %vm525_vm0, %v513_v2, 0 }
  0x10   : > { %1869 = vmatpush3.bf16.msra.mxu1 %v527_v1  ;;  %1779 = vmatpush3.bf16.msra.mxu0 %v527_v1  ;;  %s2062_s13 = sshll.u32 %s2325_s22, 5  ;;  %s2327_s9 = smov (!%p379_p7, %s1607_s9), 0  ;;  %v1656_v14 = vld [vmem:[%s2305_s3 + $0x6] sm:$0x3]  ;;  %vm506_vm2 = vcmask 1040384   ;;  %v716_v24 = vsel %vm525_vm0, %v1650_v3, 0 }
  0x11   : > { %1872 = vmatprep.subr.msk.bf16.mxu1 %vm525_vm0, %v513_v2  ;;  %1873 = vmatprep.subr.msk.bf16.mxu0 %vm525_vm0, %v1650_v3  ;;  %s1617_s14 = sshll.u32 %s398_s12, 1  ;;  %s2329_s9 = smov (!%p1608_p8, %s2327_s9), 15  ;;  %vm507_vm3 = vsmask.f32 256  ;;  %vm694_vm4 = vcmask 1047552   ;;  %v811_v46 = vsel %vm525_vm0, %v1656_v14, 0 }
  0x12   : > { %s2065_s15 = sadd.s32 %s1617_s14, %s2062_s13  ;;  %s1613_s29 = sshll.u32 %s2329_s9, 1  ;;  %vm695_vm5 = vsmask.f32 7424  ;;  %v1661_v28 = vld [vmem:[%s2305_s3 + $0x8] sm:$0x3]  ;;  %vm2128_vm6 = vmand %vm506_vm2, %vm507_vm3 }
  0x13   : > { %s1619_s16 = sshll.u32 %s2065_s15, 2  ;;  %s387_s7 = sadd.s32 %s2062_s13, %s1613_s29  ;;  %vm2134_vm7 = vmand %vm694_vm4, %vm695_vm5  ;;  %v891_v52 = vsel %vm525_vm0, %v1661_v28, 0  ;;  %v1667_v55 = vld [vmem:[%s2305_s3 + $0xa] sm:$0x3]  ;;  %v1673_v57 = vld [vmem:[%s2305_s3 + $0xc] sm:$0x3] }
  0x14   : > { %s2073_s19 = scalar_lea.vmem %s2303_s1, %s1619_s16  ;;  %s1615_s8 = sshll.u32 %s387_s7, 2 }
  0x15   : > { %v2076_v4 = vld [vmem:[%s2073_s19 + $0x8] sm:$0xf]  ;;  %v2079_v5 = vld [vmem:[%s2073_s19 + $0xc] sm:$0xf]  ;;  %v2082_v6 = vld [vmem:[%s2073_s19 + $0x10] sm:$0xf]  ;;  %s389_s12 = scalar_lea.vmem %s2302_s0, %s1615_s8  ;;  %s2274_s7 = scalar_lea.vmem %s2307_s5, %s1619_s16 }
  0x16   : > { %v2086_v7 = vcombine.low %v2076_v4, %v2079_v5  ;;  %v2089_v8 = vld [vmem:[%s2073_s19 + $0x14] sm:$0xf]  ;;  %v444_v9 = vld [vmem:[%s2073_s19] sm:$0xf]  ;;  %v445_v12 = vld [vmem:[%s2073_s19 + $0x4] sm:$0xf]  ;;  %v1648_v44 = vcombine.low %v2079_v5, %v2079_v5 }
  0x17   : > { %v2094_v10 = vcombine.low %v2082_v6, %v2089_v8  ;;  %v2100_v13 = vcombine.low %v444_v9, %v445_v12  ;;  %v442_v19 = vld [vmem:[%s389_s12] sm:$0xf]  ;;  %v443_v20 = vld [vmem:[%s389_s12 + $0x4] sm:$0xf]  ;;  %v1647_v30 = vcombine.low %v445_v12, %v445_v12  ;;  %s2331_s17 = smov (!%p2141_p9, %s406_s17), 15  ;;  %v1649_v59 = vcombine.low %v2089_v8, %v2089_v8  ;;  %s2335_s21 = smov (!%p435_p10, %s1954_s21), 3 }
  0x18   : > { %1784 = vmatprep.mubr.msk.bf16.mxu1 %vm516_vm1, %v2086_v7  ;;  %v489_v17 = vshrl.u32 %v2086_v7, 16  ;;  %v492_v18 = vshll.u32 %v2086_v7, 16  ;;  %v1633_v22 = vcombine.low %v442_v19, %v443_v20  ;;  %v1646_v34 = vcombine.low %v443_v20, %v443_v20  ;;  %v450_v60 = vld [vmem:[%s2073_s19 + $0x18] sm:$0xf]  ;;  %v451_v61 = vld [vmem:[%s2073_s19 + $0x1c] sm:$0xf] }
  0x19   : > { %1785 = vmatmul.mubr.msk.bf16.vlgmr.msra.gmra.mxu1 %vm516_vm1, %v2094_v10  ;;  %v482_v15 = vshrl.u32 %v2100_v13, 16  ;;  %v485_v16 = vshll.u32 %v2100_v13, 16  ;;  %v496_v32 = vshrl.u32 %v2094_v10, 16  ;;  %v499_v33 = vshll.u32 %v2094_v10, 16  ;;  %s2333_s17 = smov (!%p2141_p9, %s2331_s17), 15  ;;  %s1631_s15 = sshll.u32 %s2325_s22, 2 }
  0x1a   : > { %1789 = vmatpush3.bf16.msra.mxu1 %v607_v11  ;;  %v491_v25 = vrot.slane %v489_v17, 7  ;;  %v475_v26 = vshrl.u32 %v1633_v22, 16  ;;  %v478_v27 = vshll.u32 %v1633_v22, 16  ;;  %1780 = vmatprep.mubr.msk.bf16.mxu0 %vm516_vm1, %v1633_v22  ;;  %v678_v29 = vrot.slane %v492_v18, 1  ;;  %s1624_s30 = sshll.u32 %s2333_s17, 1  ;;  %s438_s16 = sadd.s32 %s1631_s15, %s2335_s21 }
  0x1b   : > { %1874 = vmatprep.subr.msk.bf16.mxu1 %vm525_vm0, %v1656_v14  ;;  %v484_v21 = vrot.slane %v482_v15, 7  ;;  %v676_v23 = vrot.slane %v485_v16, 1  ;;  %1781 = vmatmul.mubr.msk.bf16.vlgmr.msra.gmra.mxu0 %vm516_vm1, %v2100_v13  ;;  %v498_v47 = vrot.slane %v496_v32, 7  ;;  %v680_v51 = vrot.slane %v499_v33, 1  ;;  %s415_s19 = sadd.s32 %s1624_s30, %s2062_s13  ;;  %s1632_s30 = sshll.u32 %s438_s16, 1 }
  0x1c   : > { %1799 = vmatpush3.bf16.msra.mxu0 %v716_v24  ;;  %v477_v35 = vrot.slane %v475_v26, 7  ;;  %v674_v37 = vrot.slane %v478_v27, 1  ;;  %v494_v40 = vor.u32 %v492_v18, %v491_v25  ;;  %v679_v43 = vor.u32 %v678_v29, %v489_v17  ;;  %s1626_s8 = sshll.u32 %s415_s19, 2  ;;  %s440_s10 = scalar_lea.vmem %s2308_s6, %s1632_s30 }
  0x1d   : > { %v487_v31 = vor.u32 %v485_v16, %v484_v21  ;;  %v677_v38 = vor.u32 %v676_v23, %v482_v15  ;;  %1875 = vmatprep.subr.msk.bf16.mxu0 %vm525_vm0, %v1661_v28  ;;  %v501_v56 = vor.u32 %v499_v33, %v498_v47  ;;  %v681_v58 = vor.u32 %v680_v51, %v496_v32  ;;  %s417_s14 = scalar_lea.vmem %s2304_s2, %s1626_s8 }
  0x1e   : > { %v480_v41 = vor.u32 %v478_v27, %v477_v35  ;;  %v675_v42 = vor.u32 %v674_v37, %v475_v26  ;;  %v511_v53 = vsel %vm2128_vm6, %v2076_v4, %v494_v40  ;;  %v2169_v54 = vsel %vm2134_vm7, %v679_v43, %v1648_v44  ;;  %v452_v11 = vld [vmem:[%s417_s14] sm:$0xf]  ;;  %v453_v12 = vld [vmem:[%s417_s14 + $0x4] sm:$0xf] }
  0x1f   : > { %v510_v45 = vsel %vm2128_vm6, %v444_v9, %v487_v31  ;;  %v698_v50 = vsel %vm2134_vm7, %v677_v38, %v1647_v30  ;;  %v512_v62 = vsel %vm2128_vm6, %v2082_v6, %v501_v56  ;;  %v1655_v63 = vcombine.low %v450_v60, %v451_v61  ;;  %v1678_v6 = vld [vmem:[%s2305_s3 + $0xe] sm:$0x3]  ;;  %v1684_v9 = vld [vmem:[%s2305_s3 + $0x10] sm:$0x3] }
  0x20   : > { %v509_v48 = vsel %vm2128_vm6, %v442_v19, %v480_v41  ;;  %v697_v49 = vsel %vm2134_vm7, %v675_v42, %v1646_v34  ;;  %v700_v0 = vsel %vm2134_vm7, %v681_v58, %v1649_v59  ;;  %v978_v4 = vsel %vm525_vm0, %v1667_v55, 0 }
  0x21   : > { %1790 = vmatprep.mubr.msk.bf16.mxu1 %vm516_vm1, %v509_v48  ;;  %1800 = vmatprep.mubr.msk.bf16.mxu0 %vm516_vm1, %v697_v49  ;;  %v797_v1 = vshrl.u32 %v1655_v63, 16  ;;  %v800_v3 = vshll.u32 %v1655_v63, 16  ;;  %v1073_v5 = vsel %vm525_vm0, %v1673_v57, 0  ;;  %v1672_v14 = vcombine.low %v452_v11, %v453_v12 }
  0x22   : > { %1791 = vmatmul.mubr.msk.bf16.vlgmr.msra.gmra.mxu1 %vm516_vm1, %v510_v45  ;;  %v1153_v17 = vsel %vm525_vm0, %v1678_v6, 0  ;;  %v1240_v20 = vsel %vm525_vm0, %v1684_v9, 0  ;;  %v1666_v22 = vcombine.low %v451_v61, %v451_v61  ;;  %v1683_v28 = vcombine.low %v453_v12, %v453_v12 }
  0x23   : > { %1809 = vmatpush3.bf16.msra.mxu1 %v811_v46  ;;  %1801 = vmatmul.mubr.msk.bf16.vlgmr.msra.gmra.mxu0 %vm516_vm1, %v698_v50  ;;  %v799_v2 = vrot.slane %v797_v1, 7  ;;  %v1059_v15 = vshrl.u32 %v1672_v14, 16  ;;  %v966_v16 = vrot.slane %v800_v3, 1  ;;  %v1062_v19 = vshll.u32 %v1672_v14, 16 }
  0x24   : > { %1819 = vmatpush3.bf16.msra.mxu0 %v891_v52  ;;  %1794 = vmatprep.mubr.msk.bf16.mxu1 %vm516_vm1, %v511_v53 }
  0x25   : > { %1804 = vmatprep.mubr.msk.bf16.mxu0 %vm516_vm1, %v2169_v54  ;;  %1876 = vmatprep.subr.msk.bf16.mxu1 %vm525_vm0, %v1667_v55  ;;  %v802_v8 = vor.u32 %v800_v3, %v799_v2  ;;  %v1061_v18 = vrot.slane %v1059_v15, 7  ;;  %v967_v21 = vor.u32 %v966_v16, %v797_v1  ;;  %v1228_v26 = vrot.slane %v1062_v19, 1 }
  0x26   : > { %1877 = vmatprep.subr.msk.bf16.mxu0 %vm525_vm0, %v1673_v57 }
  0x27   : > { %v1064_v23 = vor.u32 %v1062_v19, %v1061_v18  ;;  %v971_v24 = vsel %vm2134_vm7, %v967_v21, %v1666_v22  ;;  %v1229_v27 = vor.u32 %v1228_v26, %v1059_v15 }
  0x29   : > { %v1066_v25 = vsel %vm2128_vm6, %v452_v11, %v1064_v23  ;;  %v1233_v29 = vsel %vm2134_vm7, %v1229_v27, %v1683_v28 }
  0x2a   : > { %1795 = vmatmul.mubr.msk.bf16.gmra.mxu1 %vm516_vm1, %v512_v62 }
  0x2b   : > { %1805 = vmatmul.mubr.msk.bf16.gmra.mxu0 %vm516_vm1, %v700_v0  ;;  %1810 = vmatprep.mubr.msk.bf16.mxu1 %vm516_vm1, %v510_v45 }
  0x2c   : > { %1820 = vmatprep.mubr.msk.bf16.mxu0 %vm516_vm1, %v2100_v13  ;;  %v804_v13 = vsel %vm2128_vm6, %v450_v60, %v802_v8 }
  0x32   : > { %1811 = vmatmul.mubr.msk.bf16.vlgmr.msra.gmra.mxu1 %vm516_vm1, %v511_v53 }
  0x33   : > { %1829 = vmatpush3.bf16.msra.mxu1 %v978_v4  ;;  %1821 = vmatmul.mubr.msk.bf16.vlgmr.msra.gmra.mxu0 %vm516_vm1, %v2086_v7 }
  0x34   : > { %1839 = vmatpush3.bf16.msra.mxu0 %v1073_v5  ;;  %1814 = vmatprep.mubr.msk.bf16.mxu1 %vm516_vm1, %v512_v62 }
  0x35   : > { %1824 = vmatprep.mubr.msk.bf16.mxu0 %vm516_vm1, %v2094_v10  ;;  %1878 = vmatprep.subr.msk.bf16.mxu1 %vm525_vm0, %v1678_v6 }
  0x36   : > { %1879 = vmatprep.subr.msk.bf16.mxu0 %vm525_vm0, %v1684_v9 }
  0x3a   : > { %1815 = vmatmul.mubr.msk.bf16.gmra.mxu1 %vm516_vm1, %v804_v13 }
  0x3b   : > { %1825 = vmatmul.mubr.msk.bf16.gmra.mxu0 %vm516_vm1, %v1655_v63  ;;  %1830 = vmatprep.mubr.msk.bf16.mxu1 %vm516_vm1, %v698_v50 }
  0x3c   : > { %1840 = vmatprep.mubr.msk.bf16.mxu0 %vm516_vm1, %v511_v53 }
  0x42   : > { %1831 = vmatmul.mubr.msk.bf16.vlgmr.msra.gmra.mxu1 %vm516_vm1, %v2169_v54 }
  0x43   : > { %1849 = vmatpush3.bf16.msra.mxu1 %v1153_v17  ;;  %1841 = vmatmul.mubr.msk.bf16.vlgmr.msra.gmra.mxu0 %vm516_vm1, %v512_v62 }
  0x44   : > { %1859 = vmatpush3.bf16.msra.mxu0 %v1240_v20  ;;  %1834 = vmatprep.mubr.msk.bf16.mxu1 %vm516_vm1, %v700_v0 }
  0x45   : > { %1844 = vmatprep.mubr.msk.bf16.mxu0 %vm516_vm1, %v804_v13 }
  0x4a   : > { %1835 = vmatmul.mubr.msk.bf16.gmra.mxu1 %vm516_vm1, %v971_v24 }
  0x4b   : > { %1845 = vmatmul.mubr.msk.bf16.gmra.mxu0 %vm516_vm1, %v1066_v25  ;;  %1850 = vmatprep.mubr.msk.bf16.mxu1 %vm516_vm1, %v2086_v7 }
  0x4c   : > { %1860 = vmatprep.mubr.msk.bf16.mxu0 %vm516_vm1, %v2169_v54 }
  0x52   : > { %1851 = vmatmul.mubr.msk.bf16.vlgmr.msra.gmra.mxu1 %vm516_vm1, %v2094_v10 }
  0x53   : > { %1861 = vmatmul.mubr.msk.bf16.vlgmr.msra.gmra.mxu0 %vm516_vm1, %v700_v0  ;;  %1854 = vmatprep.mubr.msk.bf16.mxu1 %vm516_vm1, %v1655_v63 }
  0x54   : > { %1864 = vmatprep.mubr.msk.bf16.mxu0 %vm516_vm1, %v971_v24 }
  0x5a   : > { %1855 = vmatmul.mubr.msk.bf16.gmra.mxu1 %vm516_vm1, %v1672_v14 }
  0x5b   : > { %1865 = vmatmul.mubr.msk.bf16.gmra.mxu0 %vm516_vm1, %v1233_v29 }
  0xd9   : > { %v1786_v7 = vpop.f32.mrf.mxu1 }
  0xdb   : > { %v579_v30 = vpop.f32.mrf.mxu1  ;;  %v1782_v31 = vpop.f32.mrf.mxu0 }
  0xdd   : > { %v2251_v32 = vpop.f32.mrf.mxu1  ;;  %v563_v10 = vpop.f32.mrf.mxu0 }
  0xdf   : > { %v1783_v33 = vpop.f32.mrf.mxu0  ;;  %v2253_v34 = vpop.f32.mrf.mxu1 }
  0xe1   : > { %v566_v35 = vpop.f32.mrf.mxu0 }
  0xe2   : > { %v1792_v36 = vpop.f32.mrf.mxu1 }
  0xe3   : > { %v1802_v37 = vpop.f32.mrf.mxu0  ;;  %v652_v3 = vadd.f32 %v1792_v36, %v1782_v31 }
  0xe4   : > { %v643_v38 = vpop.f32.mrf.mxu1 }
  0xe5   : > { %v752_v40 = vpop.f32.mrf.mxu0  ;;  %v644_v6 = vadd.f32 %v643_v38, %v563_v10  ;;  %v785_v11 = vadd.f32 %v1802_v37, %v652_v3 }
  0xe6   : > { %v1793_v39 = vpop.f32.mrf.mxu1 }
  0xe7   : > { %v1803_v41 = vpop.f32.mrf.mxu0  ;;  %v655_v12 = vadd.f32 %v1793_v39, %v1783_v33  ;;  %v783_v15 = vadd.f32 %v752_v40, %v644_v6 }
  0xe8   : > { %v646_v42 = vpop.f32.mrf.mxu1 }
  0xe9   : > { %v755_v43 = vpop.f32.mrf.mxu0  ;;  %v647_v16 = vadd.f32 %v646_v42, %v566_v35  ;;  %v786_v20 = vadd.f32 %v1803_v41, %v655_v12 }
  0xea   : > { %v1796_v44 = vpop.f32.mrf.mxu1 }
  0xeb   : > { %v1806_v45 = vpop.f32.mrf.mxu0  ;;  %v668_v23 = vadd.f32 %v1796_v44, %v1786_v7  ;;  %v784_v25 = vadd.f32 %v755_v43, %v647_v16 }
  0xec   : > { %v659_v46 = vpop.f32.mrf.mxu1 }
  0xed   : > { %v768_v47 = vpop.f32.mrf.mxu0  ;;  %v660_v29 = vadd.f32 %v659_v46, %v579_v30  ;;  %v789_v38 = vadd.f32 %v1806_v45, %v668_v23 }
  0xee   : > { %v1797_v48 = vpop.f32.mrf.mxu1 }
  0xef   : > { %v1807_v49 = vpop.f32.mrf.mxu0  ;;  %v671_v35 = vadd.f32 %v1797_v48, %v2251_v32  ;;  %v787_v44 = vadd.f32 %v768_v47, %v660_v29 }
  0xf0   : > { %v662_v50 = vpop.f32.mrf.mxu1 }
  0xf1   : > { %v771_v51 = vpop.f32.mrf.mxu0  ;;  %v663_v40 = vadd.f32 %v662_v50, %v2253_v34 }
  0xf2   : > { %v1812_v52 = vpop.f32.mrf.mxu1 }
  0xf3   : > { %v1822_v53 = vpop.f32.mrf.mxu0  ;;  %v880_v17 = vadd.f32 %v1812_v52, %v785_v11 }
  0xf4   : > { %v847_v54 = vpop.f32.mrf.mxu1 }
  0xf5   : > { %v927_v55 = vpop.f32.mrf.mxu0  ;;  %v878_v21 = vadd.f32 %v847_v54, %v783_v15  ;;  %v960_v26 = vadd.f32 %v1822_v53, %v880_v17 }
  0xf6   : > { %v1813_v56 = vpop.f32.mrf.mxu1 }
  0xf7   : > { %v1823_v57 = vpop.f32.mrf.mxu0  ;;  %v881_v27 = vadd.f32 %v1813_v56, %v786_v20  ;;  %v958_v10 = vadd.f32 %v927_v55, %v878_v21  ;;  %v790_v55 = vadd.f32 %v1807_v49, %v671_v35  ;;  %v788_v56 = vadd.f32 %v771_v51, %v663_v40 }
  0xf8   : > { %v850_v58 = vpop.f32.mrf.mxu1 }
  0xf9   : > { %v930_v59 = vpop.f32.mrf.mxu0  ;;  %v879_v33 = vadd.f32 %v850_v58, %v784_v25  ;;  %v961_v41 = vadd.f32 %v1823_v57, %v881_v27 }
  0xfa   : > { %v1816_v60 = vpop.f32.mrf.mxu1 }
  0xfb   : > { %v1826_v61 = vpop.f32.mrf.mxu0  ;;  %v884_v43 = vadd.f32 %v1816_v60, %v789_v38  ;;  %v959_v53 = vadd.f32 %v930_v59, %v879_v33 }
  0xfc   : > { %v863_v62 = vpop.f32.mrf.mxu1 }
  0xfd   : > { %v2255_v63 = vpop.f32.mrf.mxu0  ;;  %v882_v58 = vadd.f32 %v863_v62, %v787_v44  ;;  %v964_v34 = vadd.f32 %v1826_v61, %v884_v43 }
  0xfe   : > { %v1817_v0 = vpop.f32.mrf.mxu1 }
  0xff   : > { %v2257_v1 = vpop.f32.mrf.mxu0  ;;  %v885_v50 = vadd.f32 %v1817_v0, %v790_v55  ;;  %v962_v59 = vadd.f32 %v2255_v63, %v882_v58  ;;  %v1689_v0 = vld [vmem:[%s2306_s4] ss:$0 sm:$0xff] }
 0x100   : > { %v866_v2 = vpop.f32.mrf.mxu1 }
 0x101   : > { %v2259_v4 = vpop.f32.mrf.mxu0  ;;  %v883_v57 = vadd.f32 %v866_v2, %v788_v56 }
 0x102   : > { %v1832_v5 = vpop.f32.mrf.mxu1 }
 0x103   : > { %v1842_v8 = vpop.f32.mrf.mxu0  ;;  %v1047_v36 = vadd.f32 %v1832_v5, %v960_v26  ;;  %v963_v15 = vadd.f32 %v2259_v4, %v883_v57 }
 0x104   : > { %v1014_v9 = vpop.f32.mrf.mxu1 }
 0x105   : > { %v1109_v13 = vpop.f32.mrf.mxu0  ;;  %v1045_v42 = vadd.f32 %v1014_v9, %v958_v10  ;;  %v1142_v54 = vadd.f32 %v1842_v8, %v1047_v36 }
 0x106   : > { %v1833_v14 = vpop.f32.mrf.mxu1 }
 0x107   : > { %v1843_v18 = vpop.f32.mrf.mxu0  ;;  %v1048_v30 = vadd.f32 %v1833_v14, %v961_v41  ;;  %v1140_v45 = vadd.f32 %v1109_v13, %v1045_v42  ;;  %v965_v13 = vadd.f32 %v2257_v1, %v885_v50 }
 0x108   : > { %v1017_v19 = vpop.f32.mrf.mxu1 }
 0x109   : > { %v1112_v22 = vpop.f32.mrf.mxu0  ;;  %v1046_v5 = vadd.f32 %v1017_v19, %v959_v53  ;;  %v1143_v9 = vadd.f32 %v1843_v18, %v1048_v30 }
 0x10a   : > { %v1836_v24 = vpop.f32.mrf.mxu1 }
 0x10b   : > { %v1846_v28 = vpop.f32.mrf.mxu0  ;;  %v1051_v8 = vadd.f32 %v1836_v24, %v964_v34  ;;  %v1141_v12 = vadd.f32 %v1112_v22, %v1046_v5 }
 0x10c   : > { %v1030_v31 = vpop.f32.mrf.mxu1 }
 0x10d   : > { %v1125_v37 = vpop.f32.mrf.mxu0  ;;  %v1049_v61 = vadd.f32 %v1030_v31, %v962_v59  ;;  %v1146_v18 = vadd.f32 %v1846_v28, %v1051_v8 }
 0x10e   : > { %v1837_v39 = vpop.f32.mrf.mxu1 }
 0x10f   : > { %v1847_v7 = vpop.f32.mrf.mxu0  ;;  %v1052_v19 = vadd.f32 %v1837_v39, %v965_v13  ;;  %v1144_v4 = vadd.f32 %v1125_v37, %v1049_v61 }
 0x110   : > { %v1033_v52 = vpop.f32.mrf.mxu1 }
 0x111   : > { %v1128_v46 = vpop.f32.mrf.mxu0  ;;  %v1050_v20 = vadd.f32 %v1033_v52, %v963_v15  ;;  %v1147_v10 = vadd.f32 %v1847_v7, %v1052_v19 }
 0x112   : > { %v1852_v3 = vpop.f32.mrf.mxu1 }
 0x113   : > { %v1222_v32 = vadd.f32 %v1852_v3, %v1142_v54  ;;  %v1862_v48 = vpop.f32.mrf.mxu0  ;;  %v1145_v33 = vadd.f32 %v1128_v46, %v1050_v20 }
 0x114   : > { %v1189_v6 = vpop.f32.mrf.mxu1 }
 0x115   : > { %v1220_v47 = vadd.f32 %v1189_v6, %v1140_v45  ;;  %v1276_v60 = vpop.f32.mrf.mxu0  ;;  %v1309_v49 = vadd.f32 %v1862_v48, %v1222_v32 }
 0x116   : > { %v1853_v11 = vpop.f32.mrf.mxu1 }
 0x117   : > { %v1307_v51 = vadd.f32 %v1276_v60, %v1220_v47  ;;  %v1223_v62 = vadd.f32 %v1853_v11, %v1143_v9  ;;  %v1863_v14 = vpop.f32.mrf.mxu0  ;;  %v1324_v22 = vadd.f32 %v1689_v0, %v1309_v49 }
 0x118   : > { %v1192_v2 = vpop.f32.mrf.mxu1 }
 0x119   : > { %v1310_v16 = vadd.f32 %v1863_v14, %v1223_v62  ;;  %v1221_v63 = vadd.f32 %v1192_v2, %v1141_v12  ;;  %v1279_v17 = vpop.f32.mrf.mxu0  ;;  %v1322_v23 = vadd.f32 %v1689_v0, %v1307_v51  ;;  %v1345_v53 = vmul.f32 %v1324_v22, %v1324_v22 }
 0x11a   : > { %v1856_v21 = vpop.f32.mrf.mxu1 }
 0x11b   : > { %v1325_v24 = vadd.f32 %v1689_v0, %v1310_v16  ;;  %v1308_v1 = vadd.f32 %v1279_v17, %v1221_v63  ;;  %v1866_v25 = vpop.f32.mrf.mxu0  ;;  %v1226_v26 = vadd.f32 %v1856_v21, %v1146_v18  ;;  %v1343_v35 = vmul.f32 %v1322_v23, %v1322_v23 }
 0x11c   : > { %v1205_v27 = vpop.f32.mrf.mxu1 }
 0x11d   : > { %v1718_v29 = vpack.c.bf16 %v1325_v24, %v1324_v22  ;;  %v1323_v28 = vadd.f32 %v1689_v0, %v1308_v1  ;;  %v1292_v31 = vpop.f32.mrf.mxu0  ;;  %v1224_v36 = vadd.f32 %v1205_v27, %v1144_v4  ;;  %v1313_v42 = vadd.f32 %v1866_v25, %v1226_v26 }
 0x11e   : > { %v1857_v38 = vpop.f32.mrf.mxu1  ;;  %v1346_v58 = vmul.f32 %v1325_v24, %v1325_v24 }
 0x11f   : > { %1730 = vst [vmem:[%s2274_s7 + $0x8] sm:$0xff] %v1718_v29   ;;  %v1330_v37 = vadd.f32 %v1323_v28, %v1322_v23  ;;  %v1344_v40 = vmul.f32 %v1323_v28, %v1323_v28  ;;  %v1713_v39 = vpack.c.bf16 %v1323_v28, %v1322_v23  ;;  %v1867_v41 = vpop.f32.mrf.mxu0  ;;  %v1311_v44 = vadd.f32 %v1292_v31, %v1224_v36 }
 0x120   : > { %v1227_v43 = vadd.f32 %v1857_v38, %v1147_v10  ;;  %v1208_v52 = vpop.f32.mrf.mxu1  ;;  %v1328_v32 = vadd.f32 %v1689_v0, %v1313_v42 }
 0x121   : > { %v1331_v54 = vadd.f32 %v1330_v37, %v1324_v22  ;;  %v1351_v30 = vadd.f32 %v1344_v40, %v1343_v35  ;;  %1714 = vst [vmem:[%s2274_s7] sm:$0xff] %v1713_v39   ;;  %v1225_v55 = vadd.f32 %v1208_v52, %v1145_v33  ;;  %v1295_v7 = vpop.f32.mrf.mxu0  ;;  %v1326_v46 = vadd.f32 %v1689_v0, %v1311_v44 }
 0x122   : > { %v1314_v56 = vadd.f32 %v1867_v41, %v1227_v43  ;;  %v1349_v11 = vmul.f32 %v1328_v32, %v1328_v32 }
 0x123   : > { %v1352_v3 = vadd.f32 %v1351_v30, %v1345_v53  ;;  %v1332_v45 = vadd.f32 %v1331_v54, %v1325_v24  ;;  %v1312_v5 = vadd.f32 %v1295_v7, %v1225_v55  ;;  %v1347_v50 = vmul.f32 %v1326_v46, %v1326_v46 }
 0x124   : > { %v1329_v48 = vadd.f32 %v1689_v0, %v1314_v56 }
 0x125   : > { %v1333_v34 = vadd.f32 %v1332_v45, %v1326_v46  ;;  %v1353_v57 = vadd.f32 %v1352_v3, %v1346_v58  ;;  %v1327_v6 = vadd.f32 %v1689_v0, %v1312_v5 }
 0x126   : > { %v1728_v9 = vpack.c.bf16 %v1329_v48, %v1328_v32  ;;  %v1350_v51 = vmul.f32 %v1329_v48, %v1329_v48 }
 0x127   : > { %v1354_v47 = vadd.f32 %v1353_v57, %v1347_v50  ;;  %v1334_v60 = vadd.f32 %v1333_v34, %v1327_v6  ;;  %v1348_v59 = vmul.f32 %v1327_v6, %v1327_v6  ;;  %v1723_v8 = vpack.c.bf16 %v1327_v6, %v1326_v46 }
 0x128   : > { %1732 = vst [vmem:[%s2274_s7 + $0x18] sm:$0xff] %v1728_v9  }
 0x129   : > { %v1335_v12 = vadd.f32 %v1334_v60, %v1328_v32  ;;  %v1355_v49 = vadd.f32 %v1354_v47, %v1348_v59  ;;  %1731 = vst [vmem:[%s2274_s7 + $0x10] sm:$0xff] %v1723_v8  }
 0x12b   : > { %v1336_v62 = vadd.f32 %v1335_v12, %v1329_v48  ;;  %v1356_v14 = vadd.f32 %v1355_v49, %v1349_v11 }
 0x12d   : > { %v1337_v13 = vrot.slane %v1336_v62, 4  ;;  %v1357_v15 = vadd.f32 %v1356_v14, %v1350_v51 }
 0x12f   : > { %v1338_v61 = vadd.f32 %v1337_v13, %v1336_v62  ;;  %v1358_v0 = vrot.slane %v1357_v15, 4 }
 0x131   : > { %v1339_v2 = vrot.slane %v1338_v61, 2  ;;  %v1359_v16 = vadd.f32 %v1358_v0, %v1357_v15 }
 0x133   : > { %v1340_v63 = vadd.f32 %v1339_v2, %v1338_v61  ;;  %v1360_v17 = vrot.slane %v1359_v16, 2 }
 0x135   : > { %v1341_v18 = vrot.slane %v1340_v63, 1  ;;  %v1361_v19 = vadd.f32 %v1360_v17, %v1359_v16 }
 0x137   : > { %v1362_v20 = vrot.slane %v1361_v19, 1  ;;  %v1342_v21 = vadd.f32 %v1341_v18, %v1340_v63 }
 0x139   : > { %v1363_v22 = vadd.f32 %v1362_v20, %v1361_v19 }
 0x13b   : > { %v1365_v23 = vsel %vm506_vm2, %v1342_v21, %v1363_v22 }
 0x13c   : > { %1366 = vst [vmem:[%s440_s10] sm:$0x3] %v1365_v23 }
 0x13d PF: > { %s17_s25 = sadd.s32 1, %s1970_s25   ;;  %s2314_s21 = smov %s1962_s23 }
 0x13e   : > { %p14_p11 = scmp.ge.s32.totalorder %s17_s25, 10   ;;  %s2315_s22 = smov %s1966_s24 }
 0x13f   : > { %s2316_s23 = smov %s2319_s26  ;;  %s2317_s24 = smov %s2323_s27 }
 0x140   :  { %16 = sbr.rel (!%p14_p11) target bundleno = 3 (0x3), region = 96 }

// kernel: down_conv_forward.3
= control target key start
LH: loop header
LB: loop body
LE: loop exit
PB: predicated region body
PF: predicated region fallthrough
CT: control target
= control target key end

     0   :  { %s3549_s27 = smov 0   ;;  %s3551_s28 = smov 0   ;;  %s4336_s0 = inlined_call_operand.vmem [shape: bf16[2,16,16,128], index: 0, kind: input, shape index: {}, may-alias: {0,1,2}]   ;;  %s4337_s1 = inlined_call_operand.vmem [shape: bf16[2,16,16,128], index: 1, kind: input, shape index: {}, may-alias: {0,1,2}]   ;;  %s4338_s2 = inlined_call_operand.vmem [shape: bf16[2,16,16,128], index: 2, kind: input, shape index: {}, may-alias: {0,1,2}]   ;;  %s4339_s3 = inlined_call_operand.vmem [shape: bf16[9,128,128], index: 3, kind: input, shape index: {}]   ;;  %s4340_s4 = inlined_call_operand.vmem [shape: f32[1,128], index: 4, kind: input, shape index: {}]   ;;  %s4341_s5 = inlined_call_operand.vmem [shape: f32[1,128], index: 5, kind: input, shape index: {}]   ;;  %s4342_s6 = inlined_call_operand.vmem [shape: f32[1,128], index: 6, kind: input, shape index: {}]   ;;  %s4343_s7 = inlined_call_operand.vmem [shape: bf16[2,8,8,128], index: 7, kind: output, shape index: {0}]   ;;  %s4344_s8 = inlined_call_operand.vmem [shape: bf16[2,16,16,128], index: 8, kind: output, shape index: {1}]  }
   0x1   :  { %s3553_s29 = smov 0   ;;  %s3555_s30 = smov 0  }
   0x2   :  { %s3557_s9 = smov 0  }
   0x3 LB: > { %s28_s10 = sadd.s32 1, %s3493_s29  ;;  %s31_s11 = sadd.s32 1, %s3497_s30  ;;  %s3501_s9 = sphi %s3557_s9, %s19_s9   ;;  %s3497_s30 = sphi %s3555_s30, %s4354_s30   ;;  %s3493_s29 = sphi %s3553_s29, %s4353_s29   ;;  %s3489_s28 = sphi %s3551_s28, %s4352_s28   ;;  %s3485_s27 = sphi %s3549_s27, %s4351_s27  }
   0x4   : > { %p29_p0 = scmp.ge.s32.totalorder %s28_s10, 4  ;;  %p2676_p1 = scmp.ge.s32.totalorder %s3501_s9, 1 }
   0x5   : > { %p353_p2 = scmp.lt.s32.totalorder %s3501_s9, 9 }
   0x6   : > { %s4356_s10 = smov (%p29_p0, %s28_s10), 0  ;;  %s4358_s11 = smov (!%p29_p0, %s31_s11), %s3497_s30 }
   0x7   : > { %p354_p3 = pnand %p2676_p1, %p353_p2  ;;  %p33_p4 = scmp.ge.s32.totalorder %s4358_s11, 2 }
   0x8   : > { %s3587_s14 = sshll.u32 (!%p354_p3), %s3485_s27, 2  ;;  %p436_p6 = scmp.lt.s32.totalorder (!%p354_p3), %s3489_s28, 1 }
   0x9   : > { %s4360_s11 = smov (%p33_p4, %s4358_s11), 0  ;;  %357 = sbr.rel (%p354_p3) target bundleno = 472 (0x1d8), region = 48 }
   0xa   : > { %s2678_s17 = sadd.s32 (!%p354_p3), 4294967295, %s3587_s14  ;;  %p452_p8 = scmp.lt.s32.totalorder (!%p354_p3), %s3587_s14, 15 }
   0xb   : > { %p434_p5 = scmp.gt.s32.totalorder (!%p354_p3), %s2678_s17, 0  ;;  %p2679_p7 = scmp.lt.s32.totalorder (!%p354_p3), %s2678_s17, 15 }
   0xc   : > { %s461_s26 = sadd.s32 (!%p354_p3), 4, %s3587_s14 }
   0xd   : > { %p3698_p9 = scmp.lt.s32.totalorder (!%p354_p3), %s461_s26, 15 }
   0xe   : > { %v3391_v0 = vld [vmem:[%s4339_s3 + $0x78] sm:$0xff]   ;;  %v3393_v2 = vld [vmem:[%s4339_s3 + $0x70] sm:$0xff]   ;;  %v3395_v4 = vld [vmem:[%s4339_s3 + $0x68] sm:$0xff]   ;;  %s435_s24 = scalar_select %p434_p5, %s2678_s17, 0  ;;  %vm611_vm0 = vcmask 1040384   ;;  %vm889_vm2 = vcmask 1047552  }
   0xf   : > { %v3392_v1 = vld [vmem:[%s4339_s3 + $0x38] sm:$0xff]   ;;  %3118 = vmatprep.subr.bf16.mxu0 %v3391_v0  ;;  %v3394_v3 = vld [vmem:[%s4339_s3 + $0x30] sm:$0xff]   ;;  %v3396_v5 = vld [vmem:[%s4339_s3 + $0x28] sm:$0xff]   ;;  %s4362_s28 = smov (!%p436_p6, %s3489_s28), 1  ;;  %vm612_vm1 = vsmask.f32 256 }
  0x10   : > { %3142 = vmatprep.subr.bf16.mxu1 %v3392_v1  ;;  %3119 = vmatpush3.bf16.msra.mxu0 %v3391_v0  ;;  %s3610_s12 = sshll.u32 %s4362_s28, 5  ;;  %v3397_v6 = vld [vmem:[%s4339_s3 + $0x60] sm:$0xff]   ;;  %s4364_s24 = smov (!%p2679_p7, %s435_s24), 15  ;;  %v3399_v8 = vld [vmem:[%s4339_s3 + $0x58] sm:$0xff]   ;;  %v3401_v10 = vld [vmem:[%s4339_s3 + $0x50] sm:$0xff]   ;;  %vm2127_vm6 = vcmask 1041408  }
  0x11   : > { %3143 = vmatpush3.bf16.msra.mxu1 %v3392_v1  ;;  %3120 = vmatprep.subr.bf16.mxu0 %v3393_v2  ;;  %v3398_v7 = vld [vmem:[%s4339_s3 + $0x20] sm:$0xff]   ;;  %s2684_s19 = sshll.u32 %s4364_s24, 1  ;;  %v3400_v9 = vld [vmem:[%s4339_s3 + $0x18] sm:$0xff]   ;;  %v3402_v13 = vld [vmem:[%s4339_s3 + $0x10] sm:$0xff]   ;;  %s4366_s26 = smov (!%p3698_p9, %s461_s26), 15  ;;  %vm2448_vm7 = vcmask 1041409  }
  0x12   : > { %3144 = vmatprep.subr.bf16.mxu1 %v3394_v3  ;;  %s442_s17 = sadd.s32 %s3610_s12, %s2684_s19  ;;  %v3636_v12 = vld [vmem:[%s4341_s5] ss:$0 sm:$0xff]  ;;  %v3403_v17 = vld [vmem:[%s4339_s3 + $0x48] sm:$0xff]   ;;  %v3407_v52 = vld [vmem:[%s4339_s3 + $0xb8] sm:$0xff]   ;;  %vm890_vm4 = vsmask.f32 7424 }
  0x13   : > { %s2686_s22 = sshll.u32 %s442_s17, 2  ;;  %v3648_v16 = vld [vmem:[%s4342_s6] ss:$0 sm:$0xff]  ;;  %v3404_v23 = vld [vmem:[%s4339_s3 + $0x8] sm:$0xff]   ;;  %v3408_v56 = vld [vmem:[%s4339_s3 + $0xf8] sm:$0xff]   ;;  %s4368_s26 = smov (!%p3698_p9, %s4366_s26), 15 }
  0x14   : > { %3121 = vmatpush3.bf16.msra.mxu0 %v3393_v2  ;;  %s444_s24 = scalar_lea.vmem %s4336_s0, %s2686_s22  ;;  %v3405_v28 = vld [vmem:[%s4339_s3 + $0x40] sm:$0xff]   ;;  %vm3710_vm3 = vmand %vm611_vm0, %vm612_vm1  ;;  %v3409_v1 = vld [vmem:[%s4339_s3 + $0xb0] sm:$0xff]   ;;  %s3779_s21 = sshll.u32 %s4368_s26, 1  ;;  %vm2450_vm8 = vcmask 1042434   ;;  %vm2452_vm9 = vcmask 1043459   ;;  %vm2454_vm10 = vcmask 1044484  }
  0x15   : > { %3145 = vmatpush3.bf16.msra.mxu1 %v3394_v3  ;;  %3122 = vmatprep.subr.bf16.mxu0 %v3395_v4  ;;  %s453_s15 = scalar_select %p452_p8, %s3587_s14, 15  ;;  %v2961_v11 = vld [vmem:[%s444_s24] sm:$0xff]   ;;  %vm3762_vm5 = vmand %vm889_vm2, %vm890_vm4  ;;  %v3460_v59 = vld [vmem:[%s4339_s3 + $0x210] sm:$0xff]   ;;  %vm2456_vm11 = vcmask 1045509   ;;  %vm2458_vm12 = vcmask 1046534   ;;  %vm2460_vm13 = vcmask 1047559  }
  0x16   : > { %3146 = vmatprep.subr.bf16.mxu1 %v3396_v5  ;;  %v2962_v14 = vunpack.c.l.bf16 %v2961_v11  ;;  %v2963_v15 = vunpack.c.h.bf16 %v2961_v11  ;;  %v3406_v40 = vld [vmem:[%s4339_s3] sm:$0xff]   ;;  %s470_s23 = sadd.s32 %s3779_s21, %s3610_s12 }
  0x17   : > { %s2688_s19 = sshll.u32 %s453_s15, 1  ;;  %s2697_s15 = sshll.u32 %s470_s23, 2 }
  0x18   : > { %3123 = vmatpush3.bf16.msra.mxu0 %v3395_v4  ;;  %s3642_s22 = sadd.s32 %s2688_s19, %s3610_s12  ;;  %v510_v18 = vmul.f32 %v2962_v14, %v3636_v12  ;;  %v511_v19 = vmul.f32 %v2963_v15, %v3636_v12  ;;  %s472_s17 = scalar_lea.vmem %s4338_s2, %s2697_s15 }
  0x19   : > { %3147 = vmatpush3.bf16.msra.mxu1 %v3396_v5  ;;  %3124 = vmatprep.subr.bf16.mxu0 %v3397_v6  ;;  %s2690_s25 = sshll.u32 %s3642_s22, 2  ;;  %s2698_s22 = sshll.u32 %s3485_s27, 1 }
  0x1a   : > { %3148 = vmatprep.subr.bf16.mxu1 %v3398_v7  ;;  %s3658_s19 = scalar_lea.vmem %s4337_s1, %s2690_s25  ;;  %v519_v24 = vadd.f32 %v3648_v16, %v510_v18  ;;  %v520_v25 = vadd.f32 %v3648_v16, %v511_v19  ;;  %s4213_s21 = scalar_lea.vmem %s4344_s8, %s2690_s25 }
  0x1b   : > { %v3004_v20 = vld [vmem:[%s3658_s19 + $0x8] sm:$0xff]   ;;  %v3005_v21 = vld [vmem:[%s3658_s19 + $0x10] sm:$0xff]   ;;  %v2965_v22 = vld [vmem:[%s3658_s19] sm:$0xff]   ;;  %p4279_p10 = scmp.lt.s32.totalorder %s2698_s22, 7  ;;  %s2699_s23 = sshll.u32 %s4362_s28, 3 }
  0x1c   : > { %3125 = vmatpush3.bf16.msra.mxu0 %v3397_v6  ;;  %v2966_v26 = vunpack.c.l.bf16 %v2965_v22  ;;  %v2967_v27 = vunpack.c.h.bf16 %v2965_v22  ;;  %v2970_v29 = vunpack.c.l.bf16 %v3004_v20  ;;  %v2971_v30 = vunpack.c.h.bf16 %v3004_v20 }
  0x1d   : > { %3149 = vmatpush3.bf16.msra.mxu1 %v3398_v7  ;;  %3126 = vmatprep.subr.bf16.mxu0 %v3399_v8  ;;  %v2974_v31 = vunpack.c.l.bf16 %v3005_v21  ;;  %v2975_v32 = vunpack.c.h.bf16 %v3005_v21  ;;  %v521_v33 = vmax.f32 %v519_v24, 0.0  ;;  %v522_v34 = vmax.f32 %v520_v25, 0.0  ;;  %v3410_v7 = vld [vmem:[%s4339_s3 + $0xf0] sm:$0xff]   ;;  %v3412_v21 = vld [vmem:[%s4339_s3 + $0xe8] sm:$0xff]   ;;  %v3413_v25 = vld [vmem:[%s4339_s3 + $0xa0] sm:$0xff]   ;;  %s4370_s22 = smov (!%p4279_p10, %s2698_s22), 7 }
  0x1e   : > { %3150 = vmatprep.subr.bf16.mxu1 %v3400_v9  ;;  %v540_v35 = vmul.f32 %v2966_v26, %v3636_v12  ;;  %v541_v36 = vmul.f32 %v2967_v27, %v3636_v12  ;;  %v542_v37 = vmul.f32 %v2970_v29, %v3636_v12  ;;  %v543_v38 = vmul.f32 %v2971_v30, %v3636_v12  ;;  %v3414_v26 = vld [vmem:[%s4339_s3 + $0xe0] sm:$0xff]   ;;  %v3006_v29 = vld [vmem:[%s3658_s19 + $0x18] sm:$0xff]   ;;  %s483_s27 = sadd.s32 %s2699_s23, %s4370_s22 }
  0x1f   : > { %v544_v39 = vmul.f32 %v2974_v31, %v3636_v12  ;;  %v3682_v41 = vpack.c.bf16 %v522_v34, %v521_v33  ;;  %v545_v44 = vmul.f32 %v2975_v32, %v3636_v12  ;;  %v3415_v30 = vld [vmem:[%s4339_s3 + $0x98] sm:$0xff]   ;;  %v2978_v31 = vunpack.c.l.bf16 %v3006_v29  ;;  %s2700_s28 = sshll.u32 %s483_s27, 2 }
  0x20   : > { %3127 = vmatpush3.bf16.msra.mxu0 %v3399_v8  ;;  %v548_v42 = vadd.f32 %v3648_v16, %v540_v35  ;;  %v549_v43 = vadd.f32 %v3648_v16, %v541_v36  ;;  %v550_v45 = vadd.f32 %v3648_v16, %v542_v37  ;;  %v551_v46 = vadd.f32 %v3648_v16, %v543_v38  ;;  %v3411_v8 = vld [vmem:[%s4339_s3 + $0xa8] sm:$0xff]   ;;  %v3416_v35 = vld [vmem:[%s4339_s3 + $0xd8] sm:$0xff]   ;;  %v3417_v36 = vld [vmem:[%s4339_s3 + $0x90] sm:$0xff]   ;;  %s4309_s20 = scalar_lea.vmem %s4343_s7, %s2700_s28 }
  0x21   : > { %3151 = vmatpush3.bf16.msra.mxu1 %v3400_v9  ;;  %3128 = vmatprep.subr.bf16.mxu0 %v3401_v10  ;;  %v552_v47 = vadd.f32 %v3648_v16, %v544_v39  ;;  %v580_v48 = vshrl.u32 %v3682_v41, 16  ;;  %v583_v49 = vshll.u32 %v3682_v41, 16  ;;  %v553_v53 = vadd.f32 %v3648_v16, %v545_v44  ;;  %v3418_v37 = vld [vmem:[%s4339_s3 + $0xd0] sm:$0xff]  }
  0x22   : > { %3152 = vmatprep.subr.bf16.mxu1 %v3402_v13  ;;  %3134 = vmatprep.mubr.bf16.mxu0 %v3682_v41  ;;  %v556_v50 = vmax.f32 %v548_v42, 0.0  ;;  %v557_v51 = vmax.f32 %v549_v43, 0.0  ;;  %v558_v57 = vmax.f32 %v550_v45, 0.0  ;;  %v559_v58 = vmax.f32 %v551_v46, 0.0  ;;  %v3420_v42 = vld [vmem:[%s4339_s3 + $0xc8] sm:$0xff]   ;;  %v3421_v45 = vld [vmem:[%s4339_s3 + $0x80] sm:$0xff]  }
  0x23   : > { %v582_v54 = vrot.slane %v580_v48, 7  ;;  %v560_v60 = vmax.f32 %v552_v47, 0.0  ;;  %v561_v61 = vmax.f32 %v553_v53, 0.0  ;;  %v877_v19 = vrot.slane %v583_v49, 1  ;;  %v3422_v47 = vld [vmem:[%s4339_s3 + $0xc0] sm:$0xff]  }
  0x24   : > { %3129 = vmatpush3.bf16.msra.mxu0 %v3401_v10  ;;  %v3703_v55 = vpack.c.bf16 %v557_v51, %v556_v50  ;;  %v3719_v2 = vpack.c.bf16 %v559_v58, %v558_v57  ;;  %v2979_v32 = vunpack.c.h.bf16 %v3006_v29  ;;  %v546_v33 = vmul.f32 %v2978_v31, %v3636_v12  ;;  %v3423_v50 = vld [vmem:[%s4339_s3 + $0x138] sm:$0xff]   ;;  %v3425_v57 = vld [vmem:[%s4339_s3 + $0x130] sm:$0xff]  }
  0x25   : > { %3153 = vmatpush3.bf16.msra.mxu1 %v3402_v13  ;;  %3130 = vmatprep.subr.bf16.mxu0 %v3403_v17  ;;  %v585_v62 = vor.u32 %v583_v49, %v582_v54  ;;  %v3727_v3 = vpack.c.bf16 %v561_v61, %v560_v60  ;;  %v878_v24 = vor.u32 %v877_v19, %v580_v48  ;;  %v3424_v51 = vld [vmem:[%s4339_s3 + $0x178] sm:$0xff]   ;;  %v3426_v58 = vld [vmem:[%s4339_s3 + $0x170] sm:$0xff]  }
  0x26   : > { %3154 = vmatprep.subr.bf16.mxu1 %v3404_v23  ;;  %v587_v63 = vshrl.u32 %v3703_v55, 16  ;;  %v590_v0 = vshll.u32 %v3703_v55, 16  ;;  %v594_v6 = vshrl.u32 %v3719_v2, 16  ;;  %v597_v9 = vshll.u32 %v3719_v2, 16 }
  0x27   : > { %v614_v4 = vsel %vm3710_vm3, %v3682_v41, %v585_v62  ;;  %v601_v10 = vshrl.u32 %v3727_v3, 16  ;;  %v604_v14 = vshll.u32 %v3727_v3, 16  ;;  %v892_v27 = vsel %vm3762_vm5, %v878_v24, %v3682_v41 }
  0x28   : > { %3131 = vmatpush3.bf16.msra.mxu0 %v3403_v17  ;;  %v589_v5 = vrot.slane %v587_v63, 7  ;;  %3158 = vmatprep.mubr.bf16.mxu1 %v614_v4  ;;  %v596_v13 = vrot.slane %v594_v6, 7  ;;  %v547_v34 = vmul.f32 %v2979_v32, %v3636_v12  ;;  %v554_v38 = vadd.f32 %v3648_v16, %v546_v33  ;;  %v3428_v4 = vld [vmem:[%s4339_s3 + $0x168] sm:$0xff]   ;;  %v3437_v33 = vld [vmem:[%s4339_s3 + $0x100] sm:$0xff]  }
  0x29   : > { %3155 = vmatpush3.bf16.msra.mxu1 %v3404_v23  ;;  %3132 = vmatprep.subr.bf16.mxu0 %v3405_v28  ;;  %v603_v15 = vrot.slane %v601_v10, 7  ;;  %v879_v41 = vrot.slane %v590_v0, 1  ;;  %v881_v46 = vrot.slane %v597_v9, 1  ;;  %v883_v54 = vrot.slane %v604_v14, 1  ;;  %v3436_v32 = vld [vmem:[%s4339_s3 + $0x148] sm:$0xff]  }
  0x2a   : > { %3156 = vmatprep.subr.bf16.mxu1 %v3406_v40  ;;  %v592_v11 = vor.u32 %v590_v0, %v589_v5  ;;  %v599_v18 = vor.u32 %v597_v9, %v596_v13  ;;  %v555_v39 = vadd.f32 %v3648_v16, %v547_v34  ;;  %v562_v43 = vmax.f32 %v554_v38, 0.0  ;;  %v3427_v0 = vld [vmem:[%s4339_s3 + $0x128] sm:$0xff]   ;;  %v3440_v38 = vld [vmem:[%s4339_s3 + $0x1f8] sm:$0xff]  }
  0x2b   : > { %v606_v23 = vor.u32 %v604_v14, %v603_v15  ;;  %v880_v48 = vor.u32 %v879_v41, %v587_v63  ;;  %v884_v61 = vor.u32 %v883_v54, %v601_v10  ;;  %v3430_v14 = vld [vmem:[%s4339_s3 + $0x160] sm:$0xff]   ;;  %v3431_v15 = vld [vmem:[%s4339_s3 + $0x118] sm:$0xff]   ;;  %v3442_v41 = vld [vmem:[%s4339_s3 + $0x1f0] sm:$0xff]  }
  0x2c   : > { %3133 = vmatpush3.bf16.msra.mxu0 %v3405_v28  ;;  %v615_v17 = vsel %vm3710_vm3, %v3703_v55, %v592_v11  ;;  %v3772_v22 = vsel %vm3710_vm3, %v3719_v2, %v599_v18  ;;  %v563_v44 = vmax.f32 %v555_v39, 0.0  ;;  %v3441_v39 = vld [vmem:[%s4339_s3 + $0x1b0] sm:$0xff]   ;;  %v3454_v54 = vld [vmem:[%s4339_s3 + $0x1c0] sm:$0xff]  }
  0x2d   : > { %3157 = vmatpush3.bf16.msra.mxu1 %v3406_v40  ;;  %3166 = vmatprep.subr.bf16.mxu0 %v3407_v52  ;;  %v3794_v28 = vsel %vm3710_vm3, %v3727_v3, %v606_v23  ;;  %v3419_v40 = vld [vmem:[%s4339_s3 + $0x88] sm:$0xff]   ;;  %v893_v53 = vsel %vm3762_vm5, %v880_v48, %v3703_v55  ;;  %v3433_v23 = vld [vmem:[%s4339_s3 + $0x110] sm:$0xff]   ;;  %v3447_v48 = vld [vmem:[%s4339_s3 + $0x198] sm:$0xff]  }
  0x2e   : > { %3190 = vmatprep.subr.bf16.mxu1 %v3408_v56  ;;  %v3832_v49 = vpack.c.bf16 %v563_v44, %v562_v43  ;;  %v3444_v44 = vld [vmem:[%s4339_s3 + $0x1e8] sm:$0xff]  }
  0x2f   : > { %3135 = vmatmul.mubr.bf16.vlgmr.msra.gmra.mxu0 %v3703_v55 }
  0x30   : > { %3167 = vmatpush3.bf16.msra.mxu0 %v3407_v52  ;;  %3138 = vmatprep.mubr.bf16.mxu0 %v3719_v2  ;;  %v882_v52 = vor.u32 %v881_v46, %v594_v6  ;;  %v1038_v63 = vshll.u32 %v3832_v49, 16  ;;  %v2981_v6 = vld [vmem:[%s472_s17] sm:$0xff]  }
  0x31   : > { %3168 = vmatprep.subr.bf16.mxu0 %v3409_v1  ;;  %3159 = vmatmul.mubr.bf16.vlgmr.msra.gmra.mxu1 %v615_v17  ;;  %v2983_v9 = vunpack.c.h.bf16 %v2981_v6 }
  0x32   : > { %3191 = vmatpush3.bf16.msra.mxu1 %v3408_v56  ;;  %3162 = vmatprep.mubr.bf16.mxu1 %v3772_v22  ;;  %v1035_v56 = vshrl.u32 %v3832_v49, 16  ;;  %v3860_v60 = vsel %vm3762_vm5, %v882_v52, %v3719_v2  ;;  %v3451_v52 = vld [vmem:[%s4339_s3 + $0x188] sm:$0xff]  }
  0x33   : > { %3192 = vmatprep.subr.bf16.mxu1 %v3410_v7  ;;  %v573_v11 = vmul.f32 %v2983_v9, %v3636_v12 }
  0x34   : > { %3169 = vmatpush3.bf16.msra.mxu0 %v3409_v1  ;;  %v1037_v62 = vrot.slane %v1035_v56, 7  ;;  %v3878_v1 = vsel %vm3762_vm5, %v884_v61, %v3727_v3 }
  0x35   : > { %3170 = vmatprep.subr.bf16.mxu0 %v3411_v8 }
  0x36   : > { %3193 = vmatpush3.bf16.msra.mxu1 %v3410_v7  ;;  %v1040_v5 = vor.u32 %v1038_v63, %v1037_v62  ;;  %v3429_v7 = vld [vmem:[%s4339_s3 + $0x120] sm:$0xff]  }
  0x37   : > { %3139 = vmatmul.mubr.bf16.gmra.mxu0 %v3727_v3  ;;  %3194 = vmatprep.subr.bf16.mxu1 %v3412_v21 }
  0x38   : > { %3171 = vmatpush3.bf16.msra.mxu0 %v3411_v8  ;;  %3182 = vmatprep.mubr.bf16.mxu0 %v892_v27  ;;  %v2982_v8 = vunpack.c.l.bf16 %v2981_v6  ;;  %v3895_v13 = vsel %vm3710_vm3, %v3832_v49, %v1040_v5 }
  0x39   : > { %3172 = vmatprep.subr.bf16.mxu0 %v3413_v25  ;;  %3163 = vmatmul.mubr.bf16.gmra.mxu1 %v3794_v28 }
  0x3a   : > { %3195 = vmatpush3.bf16.msra.mxu1 %v3412_v21  ;;  %3206 = vmatprep.mubr.bf16.mxu1 %v615_v17  ;;  %v572_v10 = vmul.f32 %v2982_v8, %v3636_v12  ;;  %v575_v12 = vadd.f32 %v3648_v16, %v573_v11  ;;  %v3432_v21 = vld [vmem:[%s4339_s3 + $0x158] sm:$0xff]  }
  0x3b   : > { %3196 = vmatprep.subr.bf16.mxu1 %v3414_v26 }
  0x3c   : > { %3173 = vmatpush3.bf16.msra.mxu0 %v3413_v25  ;;  %v574_v17 = vadd.f32 %v3648_v16, %v572_v10  ;;  %v577_v19 = vmax.f32 %v575_v12, 0.0  ;;  %v3434_v25 = vld [vmem:[%s4339_s3 + $0x150] sm:$0xff]  }
  0x3d   : > { %3174 = vmatprep.subr.bf16.mxu0 %v3415_v30 }
  0x3e   : > { %3197 = vmatpush3.bf16.msra.mxu1 %v3414_v26  ;;  %v576_v18 = vmax.f32 %v574_v17, 0.0  ;;  %v3435_v26 = vld [vmem:[%s4339_s3 + $0x108] sm:$0xff]  }
  0x3f   : > { %3198 = vmatprep.subr.bf16.mxu1 %v3416_v35 }
  0x40   : > { %3175 = vmatpush3.bf16.msra.mxu0 %v3415_v30  ;;  %v3913_v24 = vpack.c.bf16 %v577_v19, %v576_v18 }
  0x41   : > { %3176 = vmatprep.subr.bf16.mxu0 %v3417_v36 }
  0x42   : > { %3199 = vmatpush3.bf16.msra.mxu1 %v3416_v35  ;;  %v1462_v16 = vshrl.u32 %v3913_v24, 16 }
  0x43   : > { %3200 = vmatprep.subr.bf16.mxu1 %v3418_v37 }
  0x44   : > { %3177 = vmatpush3.bf16.msra.mxu0 %v3417_v36  ;;  %v1464_v27 = vrot.slane %v1462_v16, 7  ;;  %v3438_v36 = vld [vmem:[%s4339_s3 + $0x140] sm:$0xff]  }
  0x45   : > { %3178 = vmatprep.subr.bf16.mxu0 %v3419_v40 }
  0x46   : > { %3201 = vmatpush3.bf16.msra.mxu1 %v3418_v37  ;;  %v3439_v37 = vld [vmem:[%s4339_s3 + $0x1b8] sm:$0xff]  }
  0x47   : > { %3202 = vmatprep.subr.bf16.mxu1 %v3420_v42 }
  0x48   : > { %3179 = vmatpush3.bf16.msra.mxu0 %v3419_v40  ;;  %v1319_v40 = vrot.slane %v1038_v63, 1 }
  0x49   : > { %3180 = vmatprep.subr.bf16.mxu0 %v3421_v45 }
  0x4a   : > { %3203 = vmatpush3.bf16.msra.mxu1 %v3420_v42  ;;  %v3443_v42 = vld [vmem:[%s4339_s3 + $0x1a8] sm:$0xff]   ;;  %v1320_v43 = vor.u32 %v1319_v40, %v1035_v56  ;;  %v3455_v56 = vld [vmem:[%s4339_s3 + $0x238] sm:$0xff]  }
  0x4b   : > { %3204 = vmatprep.subr.bf16.mxu1 %v3422_v47 }
  0x4c   : > { %3181 = vmatpush3.bf16.msra.mxu0 %v3421_v45  ;;  %v3445_v45 = vld [vmem:[%s4339_s3 + $0x1a0] sm:$0xff]   ;;  %v3977_v46 = vsel %vm3762_vm5, %v1320_v43, %v3832_v49 }
  0x4d   : > { %3214 = vmatprep.subr.bf16.mxu0 %v3423_v50 }
  0x4e   : > { %3205 = vmatpush3.bf16.msra.mxu1 %v3422_v47  ;;  %v3446_v47 = vld [vmem:[%s4339_s3 + $0x1e0] sm:$0xff]  }
  0x4f   : > { %3183 = vmatmul.mubr.bf16.vlgmr.msra.gmra.mxu0 %v893_v53  ;;  %3238 = vmatprep.subr.bf16.mxu1 %v3424_v51 }
  0x50   : > { %3215 = vmatpush3.bf16.msra.mxu0 %v3423_v50  ;;  %3186 = vmatprep.mubr.bf16.mxu0 %v3860_v60  ;;  %v3448_v50 = vld [vmem:[%s4339_s3 + $0x1d8] sm:$0xff]  }
  0x51   : > { %3216 = vmatprep.subr.bf16.mxu0 %v3425_v57  ;;  %3207 = vmatmul.mubr.bf16.vlgmr.msra.gmra.mxu1 %v3772_v22 }
  0x52   : > { %3239 = vmatpush3.bf16.msra.mxu1 %v3424_v51  ;;  %3210 = vmatprep.mubr.bf16.mxu1 %v3794_v28  ;;  %v3449_v51 = vld [vmem:[%s4339_s3 + $0x190] sm:$0xff]  }
  0x53   : > { %3240 = vmatprep.subr.bf16.mxu1 %v3426_v58 }
  0x54   : > { %3217 = vmatpush3.bf16.msra.mxu0 %v3425_v57  ;;  %v3456_v57 = vld [vmem:[%s4339_s3 + $0x230] sm:$0xff]  }
  0x55   : > { %3218 = vmatprep.subr.bf16.mxu0 %v3427_v0 }
  0x56   : > { %3241 = vmatpush3.bf16.msra.mxu1 %v3426_v58  ;;  %v3457_v58 = vld [vmem:[%s4339_s3 + $0x228] sm:$0xff]  }
  0x57   : > { %3187 = vmatmul.mubr.bf16.gmra.mxu0 %v3878_v1  ;;  %3242 = vmatprep.subr.bf16.mxu1 %v3428_v4 }
  0x58   : > { %3219 = vmatpush3.bf16.msra.mxu0 %v3427_v0  ;;  %3230 = vmatprep.mubr.bf16.mxu0 %v3703_v55  ;;  %v1465_v55 = vshll.u32 %v3913_v24, 16 }
  0x59   : > { %3220 = vmatprep.subr.bf16.mxu0 %v3429_v7  ;;  %3211 = vmatmul.mubr.bf16.gmra.mxu1 %v3895_v13 }
  0x5a   : > { %3243 = vmatpush3.bf16.msra.mxu1 %v3428_v4  ;;  %3254 = vmatprep.mubr.bf16.mxu1 %v893_v53  ;;  %v1746_v29 = vrot.slane %v1465_v55, 1  ;;  %v3923_v30 = vor.u32 %v1465_v55, %v1464_v27  ;;  %v3453_v53 = vld [vmem:[%s4339_s3 + $0x180] sm:$0xff]  }
  0x5b   : > { %3244 = vmatprep.subr.bf16.mxu1 %v3430_v14 }
  0x5c   : > { %3221 = vmatpush3.bf16.msra.mxu0 %v3429_v7  ;;  %v3925_v31 = vor.u32 %v1746_v29, %v1462_v16  ;;  %v1469_v34 = vsel %vm3710_vm3, %v3913_v24, %v3923_v30 }
  0x5d   : > { %3222 = vmatprep.subr.bf16.mxu0 %v3431_v15 }
  0x5e   : > { %3245 = vmatpush3.bf16.msra.mxu1 %v3430_v14  ;;  %v1749_v35 = vsel %vm3762_vm5, %v3925_v31, %v3913_v24 }
  0x5f   : > { %3246 = vmatprep.subr.bf16.mxu1 %v3432_v21 }
  0x60   : > { %3223 = vmatpush3.bf16.msra.mxu0 %v3431_v15 }
  0x61   : > { %3224 = vmatprep.subr.bf16.mxu0 %v3433_v23 }
  0x62   : > { %3247 = vmatpush3.bf16.msra.mxu1 %v3432_v21 }
  0x63   : > { %3248 = vmatprep.subr.bf16.mxu1 %v3434_v25 }
  0x64   : > { %3225 = vmatpush3.bf16.msra.mxu0 %v3433_v23 }
  0x65   : > { %3226 = vmatprep.subr.bf16.mxu0 %v3435_v26 }
  0x66   : > { %3249 = vmatpush3.bf16.msra.mxu1 %v3434_v25 }
  0x67   : > { %3250 = vmatprep.subr.bf16.mxu1 %v3436_v32 }
  0x68   : > { %3227 = vmatpush3.bf16.msra.mxu0 %v3435_v26 }
  0x69   : > { %3228 = vmatprep.subr.bf16.mxu0 %v3437_v33 }
  0x6a   : > { %3251 = vmatpush3.bf16.msra.mxu1 %v3436_v32 }
  0x6b   : > { %3252 = vmatprep.subr.bf16.mxu1 %v3438_v36 }
  0x6c   : > { %3229 = vmatpush3.bf16.msra.mxu0 %v3437_v33 }
  0x6d   : > { %3262 = vmatprep.subr.bf16.mxu0 %v3439_v37 }
  0x6e   : > { %3253 = vmatpush3.bf16.msra.mxu1 %v3438_v36 }
  0x6f   : > { %3231 = vmatmul.mubr.bf16.vlgmr.msra.gmra.mxu0 %v3719_v2  ;;  %3286 = vmatprep.subr.bf16.mxu1 %v3440_v38 }
  0x70   : > { %3263 = vmatpush3.bf16.msra.mxu0 %v3439_v37  ;;  %3234 = vmatprep.mubr.bf16.mxu0 %v3727_v3 }
  0x71   : > { %3264 = vmatprep.subr.bf16.mxu0 %v3441_v39  ;;  %3255 = vmatmul.mubr.bf16.vlgmr.msra.gmra.mxu1 %v3860_v60 }
  0x72   : > { %3287 = vmatpush3.bf16.msra.mxu1 %v3440_v38  ;;  %3258 = vmatprep.mubr.bf16.mxu1 %v3878_v1 }
  0x73   : > { %3288 = vmatprep.subr.bf16.mxu1 %v3442_v41 }
  0x74   : > { %3265 = vmatpush3.bf16.msra.mxu0 %v3441_v39 }
  0x75   : > { %3266 = vmatprep.subr.bf16.mxu0 %v3443_v42 }
  0x76   : > { %3289 = vmatpush3.bf16.msra.mxu1 %v3442_v41 }
  0x77   : > { %3235 = vmatmul.mubr.bf16.gmra.mxu0 %v3832_v49  ;;  %3290 = vmatprep.subr.bf16.mxu1 %v3444_v44 }
  0x78   : > { %3267 = vmatpush3.bf16.msra.mxu0 %v3443_v42  ;;  %3278 = vmatprep.mubr.bf16.mxu0 %v3772_v22  ;;  %v3450_v22 = vld [vmem:[%s4339_s3 + $0x1d0] sm:$0xff]  }
  0x79   : > { %3268 = vmatprep.subr.bf16.mxu0 %v3445_v45  ;;  %3259 = vmatmul.mubr.bf16.gmra.mxu1 %v3977_v46 }
  0x7a   : > { %3291 = vmatpush3.bf16.msra.mxu1 %v3444_v44  ;;  %3302 = vmatprep.mubr.bf16.mxu1 %v3719_v2  ;;  %v3452_v2 = vld [vmem:[%s4339_s3 + $0x1c8] sm:$0xff]  }
  0x7b   : > { %3292 = vmatprep.subr.bf16.mxu1 %v3446_v47 }
  0x7c   : > { %3269 = vmatpush3.bf16.msra.mxu0 %v3445_v45 }
  0x7d   : > { %3270 = vmatprep.subr.bf16.mxu0 %v3447_v48 }
  0x7e   : > { %3293 = vmatpush3.bf16.msra.mxu1 %v3446_v47 }
  0x7f   : > { %3294 = vmatprep.subr.bf16.mxu1 %v3448_v50 }
  0x80   : > { %3271 = vmatpush3.bf16.msra.mxu0 %v3447_v48 }
  0x81   : > { %3272 = vmatprep.subr.bf16.mxu0 %v3449_v51 }
  0x82   : > { %3295 = vmatpush3.bf16.msra.mxu1 %v3448_v50 }
  0x83   : > { %3296 = vmatprep.subr.bf16.mxu1 %v3450_v22 }
  0x84   : > { %3273 = vmatpush3.bf16.msra.mxu0 %v3449_v51 }
  0x85   : > { %3274 = vmatprep.subr.bf16.mxu0 %v3451_v52 }
  0x86   : > { %3297 = vmatpush3.bf16.msra.mxu1 %v3450_v22 }
  0x87   : > { %3298 = vmatprep.subr.bf16.mxu1 %v3452_v2 }
  0x88   : > { %3275 = vmatpush3.bf16.msra.mxu0 %v3451_v52 }
  0x89   : > { %3276 = vmatprep.subr.bf16.mxu0 %v3453_v53 }
  0x8a   : > { %3299 = vmatpush3.bf16.msra.mxu1 %v3452_v2 }
  0x8b   : > { %3300 = vmatprep.subr.bf16.mxu1 %v3454_v54 }
  0x8c   : > { %3277 = vmatpush3.bf16.msra.mxu0 %v3453_v53 }
  0x8d   : > { %3310 = vmatprep.subr.bf16.mxu0 %v3455_v56 }
  0x8e   : > { %3301 = vmatpush3.bf16.msra.mxu1 %v3454_v54 }
  0x8f   : > { %3279 = vmatmul.mubr.bf16.vlgmr.msra.gmra.mxu0 %v3794_v28  ;;  %3334 = vmatprep.subr.bf16.mxu1 %v3455_v56  ;;  %v3458_v28 = vld [vmem:[%s4339_s3 + $0x220] sm:$0xff]  }
  0x90   : > { %3311 = vmatpush3.bf16.msra.mxu0 %v3455_v56  ;;  %3282 = vmatprep.mubr.bf16.mxu0 %v3895_v13 }
  0x91   : > { %3312 = vmatprep.subr.bf16.mxu0 %v3456_v57  ;;  %3303 = vmatmul.mubr.bf16.vlgmr.msra.gmra.mxu1 %v3727_v3  ;;  %v3459_v3 = vld [vmem:[%s4339_s3 + $0x218] sm:$0xff]  }
  0x92   : > { %3342 = vmatpush3.bf16.msra.mxu1 %v3455_v56  ;;  %3306 = vmatprep.mubr.bf16.mxu1 %v3832_v49  ;;  %v3461_v49 = vld [vmem:[%s4339_s3 + $0x208] sm:$0xff]  }
  0x93   : > { %3335 = vmatprep.subr.bf16.mxu1 %v3456_v57 }
  0x94   : > { %3313 = vmatpush3.bf16.msra.mxu0 %v3456_v57 }
  0x95   : > { %3314 = vmatprep.subr.bf16.mxu0 %v3457_v58 }
  0x96   : > { %3343 = vmatpush3.bf16.msra.mxu1 %v3456_v57 }
  0x97   : > { %3283 = vmatmul.mubr.bf16.gmra.mxu0 %v1469_v34  ;;  %3336 = vmatprep.subr.bf16.mxu1 %v3457_v58 }
  0x98   : > { %3315 = vmatpush3.bf16.msra.mxu0 %v3457_v58  ;;  %3326 = vmatprep.mubr.bf16.mxu0 %v3860_v60  ;;  %v3462_v60 = vld [vmem:[%s4339_s3 + $0x200] sm:$0xff]  }
  0x99   : > { %3316 = vmatprep.subr.bf16.mxu0 %v3458_v28  ;;  %3307 = vmatmul.mubr.bf16.gmra.mxu1 %v3913_v24 }
  0x9a   : > { %3344 = vmatpush3.bf16.msra.mxu1 %v3457_v58  ;;  %3330 = vmatprep.mubr.bf16.mxu1 %v3977_v46 }
  0x9b   : > { %3337 = vmatprep.subr.bf16.mxu1 %v3458_v28 }
  0x9c   : > { %3317 = vmatpush3.bf16.msra.mxu0 %v3458_v28 }
  0x9d   : > { %3318 = vmatprep.subr.bf16.mxu0 %v3459_v3 }
  0x9e   : > { %3345 = vmatpush3.bf16.msra.mxu1 %v3458_v28 }
  0x9f   : > { %3338 = vmatprep.subr.bf16.mxu1 %v3459_v3 }
  0xa0   : > { %3319 = vmatpush3.bf16.msra.mxu0 %v3459_v3 }
  0xa1   : > { %3320 = vmatprep.subr.bf16.mxu0 %v3460_v59 }
  0xa2   : > { %3346 = vmatpush3.bf16.msra.mxu1 %v3459_v3 }
  0xa3   : > { %3339 = vmatprep.subr.bf16.mxu1 %v3460_v59 }
  0xa4   : > { %3321 = vmatpush3.bf16.msra.mxu0 %v3460_v59 }
  0xa5   : > { %3322 = vmatprep.subr.bf16.mxu0 %v3461_v49 }
  0xa6   : > { %3347 = vmatpush3.bf16.msra.mxu1 %v3460_v59 }
  0xa7   : > { %3340 = vmatprep.subr.bf16.mxu1 %v3461_v49 }
  0xa8   : > { %3323 = vmatpush3.bf16.msra.mxu0 %v3461_v49 }
  0xa9   : > { %3324 = vmatprep.subr.bf16.mxu0 %v3462_v60 }
  0xaa   : > { %3348 = vmatpush3.bf16.msra.mxu1 %v3461_v49 }
  0xab   : > { %3341 = vmatprep.subr.bf16.mxu1 %v3462_v60 }
  0xac   : > { %3325 = vmatpush3.bf16.msra.mxu0 %v3462_v60 }
  0xae   : > { %3349 = vmatpush3.bf16.msra.mxu1 %v3462_v60 }
  0xaf   : > { %3327 = vmatmul.mubr.bf16.vlgmr.msra.gmra.mxu0 %v3878_v1 }
  0xb1   : > { %3331 = vmatmul.mubr.bf16.vlgmr.msra.gmra.mxu1 %v1749_v35 }
  0xef   : > { %v3136_v61 = vpop.f32.mrf.mxu0 }
  0xf1   : > { %v733_v62 = vpop.f32.mrf.mxu0  ;;  %v3160_v63 = vpop.f32.mrf.mxu1 }
  0xf2   : > { %v855_v28 = vadd.f32 %v3160_v63, %v3136_v61 }
  0xf3   : > { %v4051_v0 = vpop.f32.mrf.mxu0  ;;  %v846_v4 = vpop.f32.mrf.mxu1 }
  0xf4   : > { %v847_v6 = vadd.f32 %v846_v4, %v733_v62 }
  0xf5   : > { %v4053_v5 = vpop.f32.mrf.mxu0  ;;  %v4055_v7 = vpop.f32.mrf.mxu1 }
  0xf6   : > { %v858_v61 = vadd.f32 %v4055_v7, %v4051_v0 }
  0xf7   : > { %v3140_v8 = vpop.f32.mrf.mxu0  ;;  %v4057_v1 = vpop.f32.mrf.mxu1 }
  0xf9   : > { %v749_v9 = vpop.f32.mrf.mxu0  ;;  %v3164_v20 = vpop.f32.mrf.mxu1 }
  0xfa   : > { %v871_v60 = vadd.f32 %v3164_v20, %v3140_v8  ;;  %v3503_v20 = vmov 1983009808  }
  0xfb   : > { %v4059_v10 = vpop.f32.mrf.mxu0  ;;  %v862_v11 = vpop.f32.mrf.mxu1 }
  0xfc   : > { %v863_v13 = vadd.f32 %v862_v11, %v749_v9 }
  0xfd   : > { %v4061_v14 = vpop.f32.mrf.mxu1  ;;  %v752_v15 = vpop.f32.mrf.mxu0 }
  0xff   : > { %v865_v17 = vpop.f32.mrf.mxu1 }
 0x100   : > { %v866_v12 = vadd.f32 %v865_v17, %v752_v15 }
 0x10f   : > { %v3184_v18 = vpop.f32.mrf.mxu0 }
 0x110   : > { %v1028_v59 = vadd.f32 %v3184_v18, %v855_v28 }
 0x111   : > { %v995_v19 = vpop.f32.mrf.mxu0  ;;  %v3208_v30 = vpop.f32.mrf.mxu1 }
 0x112   : > { %v1026_v21 = vadd.f32 %v995_v19, %v847_v6  ;;  %v1175_v4 = vadd.f32 %v3208_v30, %v1028_v59  ;;  %v1963_v30 = vlaneseq }
 0x113   : > { %v3185_v23 = vpop.f32.mrf.mxu0  ;;  %v1142_v31 = vpop.f32.mrf.mxu1 }
 0x114   : > { %v1173_v11 = vadd.f32 %v1142_v31, %v1026_v21  ;;  %v850_v21 = vadd.f32 %v4057_v1, %v4053_v5 }
 0x115   : > { %v4063_v24 = vpop.f32.mrf.mxu0  ;;  %v3209_v32 = vpop.f32.mrf.mxu1 }
 0x116   : > { %v1027_v0 = vadd.f32 %v4063_v24, %v850_v21 }
 0x117   : > { %v3188_v16 = vpop.f32.mrf.mxu0  ;;  %v4071_v33 = vpop.f32.mrf.mxu1 }
 0x118   : > { %v1032_v6 = vadd.f32 %v3188_v16, %v871_v60  ;;  %v1961_v16 = vunpack.c.l.s4 %v3503_v20  ;;  %v1964_v60 = vshrl.u32 %v1963_v30, 7 }
 0x119   : > { %v1011_v55 = vpop.f32.mrf.mxu0  ;;  %v3212_v34 = vpop.f32.mrf.mxu1 }
 0x11a   : > { %v4065_v25 = vadd.f32 %v1011_v55, %v863_v13  ;;  %v1029_v55 = vadd.f32 %v3185_v23, %v858_v61  ;;  %v1962_v59 = vunpack.c.0.s8 %v1961_v16 }
 0x11b   : > { %v4067_v26 = vpop.f32.mrf.mxu0  ;;  %v4073_v35 = vpop.f32.mrf.mxu1 }
 0x11c   : > { %v1176_v23 = vadd.f32 %v3209_v32, %v1029_v55 }
 0x11d   : > { %v1014_v27 = vpop.f32.mrf.mxu0  ;;  %v4075_v37 = vpop.f32.mrf.mxu1 }
 0x11e   : > { %v4069_v29 = vadd.f32 %v1014_v27, %v866_v12  ;;  %v1179_v12 = vadd.f32 %v3212_v34, %v1032_v6  ;;  %v874_v34 = vadd.f32 %v4061_v14, %v4059_v10  ;;  %v4126_v10 = vld [vmem:[%s4340_s4] ss:$0 sm:$0xff]  ;;  %v1174_v14 = vadd.f32 %v4071_v33, %v1027_v0 }
 0x11f   : > { %v4077_v39 = vpop.f32.mrf.mxu1 }
 0x12f   : > { %v3232_v36 = vpop.f32.mrf.mxu0 }
 0x130   : > { %v1313_v13 = vadd.f32 %v3232_v36, %v1175_v4 }
 0x131   : > { %v1280_v38 = vpop.f32.mrf.mxu0  ;;  %v3256_v40 = vpop.f32.mrf.mxu1 }
 0x132   : > { %v1311_v19 = vadd.f32 %v1280_v38, %v1173_v11  ;;  %v1455_v63 = vadd.f32 %v3256_v40, %v1313_v13  ;;  %v1033_v40 = vadd.f32 %v4067_v26, %v874_v34  ;;  %v1177_v26 = vadd.f32 %v4073_v35, %v4065_v25 }
 0x133   : > { %v3233_v41 = vpop.f32.mrf.mxu0  ;;  %v1422_v42 = vpop.f32.mrf.mxu1 }
 0x134   : > { %v1453_v31 = vadd.f32 %v1422_v42, %v1311_v19  ;;  %v1314_v1 = vadd.f32 %v3233_v41, %v1176_v23  ;;  %v4136_v41 = vsub.s32 %v1962_v59, %v1964_v60 }
 0x135   : > { %v4079_v43 = vpop.f32.mrf.mxu0  ;;  %v4081_v44 = vpop.f32.mrf.mxu1 }
 0x136   : > { %v1456_v11 = vadd.f32 %v4081_v44, %v1314_v1 }
 0x137   : > { %v3236_v45 = vpop.f32.mrf.mxu0  ;;  %v4083_v46 = vpop.f32.mrf.mxu1 }
 0x138   : > { %v1317_v18 = vadd.f32 %v3236_v45, %v1179_v12 }
 0x139   : > { %v4085_v47 = vpop.f32.mrf.mxu0  ;;  %v3260_v48 = vpop.f32.mrf.mxu1 }
 0x13a   : > { %v1459_v7 = vadd.f32 %v3260_v48, %v1317_v18  ;;  %v1180_v48 = vadd.f32 %v4075_v37, %v1033_v40  ;;  %v1315_v25 = vadd.f32 %v4085_v47, %v1177_v26 }
 0x13b   : > { %v4087_v50 = vpop.f32.mrf.mxu0  ;;  %v4089_v51 = vpop.f32.mrf.mxu1 }
 0x13c   : > { %v1318_v35 = vadd.f32 %v4087_v50, %v1180_v48 }
 0x13d   : > { %v4091_v22 = vpop.f32.mrf.mxu0  ;;  %v4093_v52 = vpop.f32.mrf.mxu1 }
 0x13e   : > { %v1460_v19 = vadd.f32 %v4093_v52, %v1318_v35 }
 0x13f   : > { %v4095_v53 = vpop.f32.mrf.mxu1 }
 0x14f   : > { %v3280_v2 = vpop.f32.mrf.mxu0 }
 0x150   : > { %v1602_v36 = vadd.f32 %v3280_v2, %v1455_v63  ;;  %v1178_v2 = vadd.f32 %v4077_v39, %v4069_v29 }
 0x151   : > { %v1569_v54 = vpop.f32.mrf.mxu0  ;;  %v3304_v56 = vpop.f32.mrf.mxu1 }
 0x152   : > { %v1600_v38 = vadd.f32 %v1569_v54, %v1453_v31  ;;  %v1740_v4 = vadd.f32 %v3304_v56, %v1602_v36  ;;  %v1316_v37 = vadd.f32 %v4091_v22, %v1178_v2  ;;  %v1457_v22 = vadd.f32 %v4089_v51, %v1315_v25 }
 0x153   : > { %v4097_v57 = vpop.f32.mrf.mxu0  ;;  %v1707_v58 = vpop.f32.mrf.mxu1 }
 0x154   : > { %v1738_v24 = vadd.f32 %v1707_v58, %v1600_v38  ;;  %v1458_v61 = vadd.f32 %v4095_v53, %v1316_v37 }
 0x155   : > { %v4099_v3 = vpop.f32.mrf.mxu0  ;;  %v4101_v49 = vpop.f32.mrf.mxu1 }
 0x157   : > { %v3284_v62 = vpop.f32.mrf.mxu0  ;;  %v4103_v9 = vpop.f32.mrf.mxu1 }
 0x158   : > { %v1606_v5 = vadd.f32 %v3284_v62, %v1459_v7  ;;  %v1312_v62 = vadd.f32 %v4079_v43, %v1174_v14  ;;  %v1603_v43 = vadd.f32 %v4097_v57, %v1456_v11 }
 0x159   : > { %v4105_v15 = vpop.f32.mrf.mxu0  ;;  %v3308_v17 = vpop.f32.mrf.mxu1 }
 0x15a   : > { %v1744_v6 = vadd.f32 %v3308_v17, %v1606_v5  ;;  %v1454_v17 = vadd.f32 %v4083_v46, %v1312_v62  ;;  %v1741_v20 = vadd.f32 %v4101_v49, %v1603_v43  ;;  %v1604_v30 = vadd.f32 %v4105_v15, %v1457_v22 }
 0x15b   : > { %v4109_v27 = vpop.f32.mrf.mxu0  ;;  %v4111_v8 = vpop.f32.mrf.mxu1 }
 0x15c   : > { %v1601_v16 = vadd.f32 %v4099_v3, %v1454_v17  ;;  %v1607_v49 = vadd.f32 %v4109_v27, %v1460_v19 }
 0x15d   : > { %v4119_v45 = vpop.f32.mrf.mxu0  ;;  %v4121_v28 = vpop.f32.mrf.mxu1 }
 0x15e   : > { %v1739_v43 = vadd.f32 %v4103_v9, %v1601_v16  ;;  %v4187_v17 = vadd.f32 %v4119_v45, %v1458_v61 }
 0x15f   : > { %v4134_v54 = vpop.f32.mrf.mxu1 }
 0x16f   : > { %v3328_v42 = vpop.f32.mrf.mxu0 }
 0x170   : > { %v1882_v32 = vadd.f32 %v3328_v42, %v1740_v4 }
 0x171   : > { %v1849_v56 = vpop.f32.mrf.mxu0  ;;  %v3332_v29 = vpop.f32.mrf.mxu1 }
 0x172   : > { %v1897_v33 = vadd.f32 %v4126_v10, %v1882_v32  ;;  %v1880_v58 = vadd.f32 %v1849_v56, %v1738_v24  ;;  %v1886_v13 = vadd.f32 %v3332_v29, %v1744_v6 }
 0x173   : > { %v3329_v14 = vpop.f32.mrf.mxu0  ;;  %v1865_v6 = vpop.f32.mrf.mxu1 }
 0x174   : > { %v4144_v39 = vmax.f32 %v1897_v33, 0.0  ;;  %v1895_v12 = vadd.f32 %v4126_v10, %v1880_v58  ;;  %v1901_v50 = vadd.f32 %v4126_v10, %v1886_v13  ;;  %v1742_v33 = vadd.f32 %v4111_v8, %v1604_v30 }
 0x175   : > { %v1883_v25 = vadd.f32 %v3329_v14, %v1741_v20 }
 0x176   : > { %v1993_v44 = vcombine.high %v4144_v39, %v4144_v39  ;;  %v2000_v47 = vrot.slane %v4144_v39, %v4136_v41  ;;  %v4157_v63 = vmax.f32 %v1895_v12, 0.0  ;;  %v4161_v55 = vmax.f32 %v1901_v50, 0.0  ;;  %v1852_v12 = vpop.f32.mrf.mxu0 }
 0x177   : > { %v4193_v20 = vadd.f32 %v1852_v12, %v1739_v43 }
 0x178   : > { %v2007_v57 = vrot.slane %v1993_v44, %v4136_v41  ;;  %v2008_v18 = vcombine.high %v2000_v47, %v2000_v47  ;;  %v2184_v46 = vsel %vm2127_vm6, %v2000_v47, -inf  ;;  %v2061_v31 = vcombine.high %v4161_v55, %v4161_v55 }
 0x179   : > { %v2185_v51 = vrot.slane %v2184_v46, 4  ;;  %v2068_v7 = vrot.slane %v4161_v55, %v4136_v41  ;;  %v1959_v38 = vcombine.high %v4157_v63, %v4157_v63  ;;  %v1966_v26 = vrot.slane %v4157_v63, %v4136_v41 }
 0x17a   : > { %v2009_v21 = vcombine.high %v2007_v57, %v2007_v57  ;;  %v2191_v52 = vsel %vm2127_vm6, %v2008_v18, -inf  ;;  %v2198_v53 = vsel %vm2127_vm6, %v2007_v57, -inf  ;;  %v2075_v15 = vrot.slane %v2061_v31, %v4136_v41 }
 0x17b   : > { %v2186_v36 = vmax.f32 %v2184_v46, %v2185_v51  ;;  %v2192_v34 = vrot.slane %v2191_v52, 4  ;;  %v2199_v0 = vrot.slane %v2198_v53, 4  ;;  %v2076_v4 = vcombine.high %v2068_v7, %v2068_v7 }
 0x17c   : > { %v2205_v3 = vsel %vm2127_vm6, %v2009_v21, -inf  ;;  %v2077_v5 = vcombine.high %v2075_v15, %v2075_v15  ;;  %v2296_v1 = vsel %vm2127_vm6, %v2068_v7, -inf  ;;  %v2310_v42 = vsel %vm2127_vm6, %v2075_v15, -inf }
 0x17d   : > { %v2187_v23 = vrot.slane %v2186_v36, 2  ;;  %v2193_v40 = vmax.f32 %v2191_v52, %v2192_v34  ;;  %v2200_v59 = vmax.f32 %v2198_v53, %v2199_v0  ;;  %v2206_v60 = vrot.slane %v2205_v3, 4 }
 0x17e   : > { %v2297_v2 = vrot.slane %v2296_v1, 4  ;;  %v2303_v56 = vsel %vm2127_vm6, %v2076_v4, -inf  ;;  %v2311_v62 = vrot.slane %v2310_v42, 4  ;;  %v2317_v58 = vsel %vm2127_vm6, %v2077_v5, -inf }
 0x17f   : > { %v2188_v24 = vmax.f32 %v2186_v36, %v2187_v23  ;;  %v2194_v27 = vrot.slane %v2193_v40, 2  ;;  %v2207_v32 = vmax.f32 %v2205_v3, %v2206_v60  ;;  %v2201_v48 = vrot.slane %v2200_v59, 2 }
 0x180   : > { %v1973_v11 = vrot.slane %v1959_v38, %v4136_v41  ;;  %v2298_v29 = vmax.f32 %v2296_v1, %v2297_v2  ;;  %v2304_v13 = vrot.slane %v2303_v56, 4  ;;  %v1974_v44 = vcombine.high %v1966_v26, %v1966_v26 }
 0x181   : > { %v2195_v35 = vmax.f32 %v2193_v40, %v2194_v27  ;;  %v2208_v37 = vrot.slane %v2207_v32, 2  ;;  %v1884_v47 = vadd.f32 %v1865_v6, %v1742_v33  ;;  %v2189_v50 = vrot.slane %v2188_v24, 1 }
 0x182   : > { %v2202_v22 = vmax.f32 %v2200_v59, %v2201_v48  ;;  %v2312_v8 = vmax.f32 %v2310_v42, %v2311_v62  ;;  %v2318_v19 = vrot.slane %v2317_v58, 4  ;;  %v4190_v57 = vadd.f32 %v4121_v28, %v1607_v49 }
 0x183   : > { %v1975_v18 = vcombine.high %v1973_v11, %v1973_v11  ;;  %v1898_v46 = vadd.f32 %v4126_v10, %v1883_v25  ;;  %v2196_v30 = vrot.slane %v2195_v35, 1  ;;  %v2209_v51 = vmax.f32 %v2207_v32, %v2208_v37 }
 0x184   : > { %v2299_v9 = vrot.slane %v2298_v29, 2  ;;  %v2305_v16 = vmax.f32 %v2303_v56, %v2304_v13  ;;  %v2128_v45 = vsel %vm2127_vm6, %v1966_v26, -inf  ;;  %v2135_v61 = vsel %vm2127_vm6, %v1974_v44, -inf }
 0x185   : > { %v2142_v21 = vsel %vm2127_vm6, %v1973_v11, -inf  ;;  %v1899_v52 = vadd.f32 %v4126_v10, %v1884_v47  ;;  %v4199_v53 = vmax.f32 %v2188_v24, %v2189_v50  ;;  %v2203_v28 = vrot.slane %v2202_v22, 1 }
 0x186   : > { %v2313_v31 = vrot.slane %v2312_v8, 2  ;;  %v2319_v36 = vmax.f32 %v2317_v58, %v2318_v19  ;;  %v2129_v34 = vrot.slane %v2128_v45, 4  ;;  %v2136_v0 = vrot.slane %v2135_v61, 4 }
 0x187   : > { %v2143_v7 = vrot.slane %v2142_v21, 4  ;;  %v2149_v49 = vsel %vm2127_vm6, %v1975_v18, -inf  ;;  %v4202_v3 = vmax.f32 %v2195_v35, %v2196_v30  ;;  %v2210_v15 = vrot.slane %v2209_v51, 1 }
 0x188   : > { %v2300_v38 = vmax.f32 %v2298_v29, %v2299_v9  ;;  %v2306_v23 = vrot.slane %v2305_v16, 2  ;;  %v2130_v40 = vmax.f32 %v2128_v45, %v2129_v34  ;;  %v2137_v59 = vmax.f32 %v2135_v61, %v2136_v0 }
 0x189   : > { %v2144_v60 = vmax.f32 %v2142_v21, %v2143_v7  ;;  %v2150_v4 = vrot.slane %v2149_v49, 4  ;;  %v2314_v5 = vmax.f32 %v2312_v8, %v2313_v31  ;;  %v2320_v1 = vrot.slane %v2319_v36, 2 }
 0x18a   : > { %v4204_v42 = vmax.f32 %v1899_v52, 0.0  ;;  %v4206_v14 = vmax.f32 %v1898_v46, 0.0  ;;  %v2131_v24 = vrot.slane %v2130_v40, 2  ;;  %v2138_v27 = vrot.slane %v2137_v59, 2 }
 0x18b   : > { %v2145_v32 = vrot.slane %v2144_v60, 2  ;;  %v2151_v26 = vmax.f32 %v2149_v49, %v2150_v4  ;;  %v4215_v48 = vmax.f32 %v2202_v22, %v2203_v28  ;;  %v2301_v6 = vrot.slane %v2300_v38, 1 }
 0x18c   : > { %v2027_v2 = vcombine.high %v4204_v42, %v4204_v42  ;;  %v2034_v56 = vrot.slane %v4204_v42, %v4136_v41  ;;  %v2992_v62 = vpack.c.bf16 %v4206_v14, %v4144_v39  ;;  %v2132_v33 = vmax.f32 %v2130_v40, %v2131_v24 }
 0x18d   : > { %v2139_v58 = vmax.f32 %v2137_v59, %v2138_v27  ;;  %v2152_v11 = vrot.slane %v2151_v26, 2  ;;  %v4223_v25 = vmax.f32 %v2209_v51, %v2210_v15  ;;  %v2307_v13 = vmax.f32 %v2305_v16, %v2306_v23 }
 0x18e   : > { %v2041_v35 = vrot.slane %v2027_v2, %v4136_v41  ;;  %v2042_v37 = vcombine.high %v2034_v56, %v2034_v56  ;;  %v2240_v29 = vsel %vm2127_vm6, %v2034_v56, -inf  ;;  %3007 = vst [vmem:[%s4213_s21 + $0x8] sm:$0xff] %v2992_v62   ;;  %v2315_v12 = vrot.slane %v2314_v5, 1 }
 0x18f   : > { %v2321_v43 = vmax.f32 %v2319_v36, %v2320_v1  ;;  %v2146_v44 = vmax.f32 %v2144_v60, %v2145_v32  ;;  %v2241_v50 = vrot.slane %v2240_v29, 4  ;;  %v2302_v8 = vmax.f32 %v2300_v38, %v2301_v6 }
 0x190   : > { %v2043_v47 = vcombine.high %v2041_v35, %v2041_v35  ;;  %v2247_v39 = vsel %vm2127_vm6, %v2042_v37, -inf  ;;  %v2254_v22 = vsel %vm2127_vm6, %v2041_v35, -inf  ;;  %v2133_v19 = vrot.slane %v2132_v33, 1 }
 0x191   : > { %v2140_v18 = vrot.slane %v2139_v58, 1  ;;  %v2153_v46 = vmax.f32 %v2151_v26, %v2152_v11  ;;  %v2242_v30 = vmax.f32 %v2240_v29, %v2241_v50  ;;  %v2248_v51 = vrot.slane %v2247_v39, 4 }
 0x192   : > { %v2255_v9 = vrot.slane %v2254_v22, 4  ;;  %v2261_v45 = vsel %vm2127_vm6, %v2043_v47, -inf  ;;  %v2308_v61 = vrot.slane %v2307_v13, 1  ;;  %v2322_v16 = vrot.slane %v2321_v43, 1 }
 0x193   : > { %v2147_v21 = vrot.slane %v2146_v44, 1  ;;  %v2010_v52 = vcombine.high %v4206_v14, %v4206_v14  ;;  %v2243_v28 = vrot.slane %v2242_v30, 2  ;;  %v2249_v31 = vmax.f32 %v2247_v39, %v2248_v51 }
 0x194   : > { %v2256_v36 = vmax.f32 %v2254_v22, %v2255_v9  ;;  %v2262_v34 = vrot.slane %v2261_v45, 4  ;;  %v2134_v0 = vmax.f32 %v2132_v33, %v2133_v19  ;;  %v2141_v7 = vmax.f32 %v2139_v58, %v2140_v18 }
 0x195   : > { %v2154_v49 = vrot.slane %v2153_v46, 1  ;;  %v2017_v15 = vrot.slane %v4206_v14, %v4136_v41  ;;  %v2244_v38 = vmax.f32 %v2242_v30, %v2243_v28  ;;  %v2250_v23 = vrot.slane %v2249_v31, 2 }
 0x196   : > { %v2257_v40 = vrot.slane %v2256_v36, 2  ;;  %v2263_v59 = vmax.f32 %v2261_v45, %v2262_v34  ;;  %v2309_v60 = vmax.f32 %v2307_v13, %v2308_v61  ;;  %v2316_v4 = vmax.f32 %v2314_v5, %v2315_v12  ;;  %v3333_v61 = vpop.f32.mrf.mxu1 }
 0x197   : > { %v2323_v1 = vmax.f32 %v2321_v43, %v2322_v16  ;;  %v2148_v24 = vmax.f32 %v2146_v44, %v2147_v21  ;;  %v2245_v27 = vrot.slane %v2244_v38, 1  ;;  %v2251_v32 = vmax.f32 %v2249_v31, %v2250_v23 }
 0x198   : > { %v2258_v26 = vmax.f32 %v2256_v36, %v2257_v40  ;;  %v2264_v2 = vrot.slane %v2263_v59, 2  ;;  %v2155_v56 = vmax.f32 %v2153_v46, %v2154_v49  ;;  %v2352_v62 = vmax.f32 %v2134_v0, %v4199_v53 }
 0x199   : > { %v2024_v6 = vrot.slane %v2010_v52, %v4136_v41  ;;  %v2025_v33 = vcombine.high %v2017_v15, %v2017_v15  ;;  %v2353_v14 = vmax.f32 %v2141_v7, %v4202_v3  ;;  %v2246_v58 = vmax.f32 %v2244_v38, %v2245_v27 }
 0x19a   : > { %v2252_v11 = vrot.slane %v2251_v32, 1  ;;  %v2259_v35 = vrot.slane %v2258_v26, 1  ;;  %v2265_v5 = vmax.f32 %v2263_v59, %v2264_v2  ;;  %v2212_v29 = vsel %vm2127_vm6, %v2017_v15, -inf }
 0x19b   : > { %v2026_v37 = vcombine.high %v2024_v6, %v2024_v6  ;;  %v2219_v13 = vsel %vm2127_vm6, %v2025_v33, -inf  ;;  %v2360_v44 = vmax.f32 %v2246_v58, %v2302_v8  ;;  %v2213_v53 = vrot.slane %v2212_v29, 4 }
 0x19c   : > { %v2253_v12 = vmax.f32 %v2251_v32, %v2252_v11  ;;  %v2260_v43 = vmax.f32 %v2258_v26, %v2259_v35  ;;  %v2266_v47 = vrot.slane %v2265_v5, 1  ;;  %v2220_v50 = vrot.slane %v2219_v13, 4 }
 0x19d   : > { %v2226_v39 = vsel %vm2127_vm6, %v2024_v6, -inf  ;;  %v2233_v3 = vsel %vm2127_vm6, %v2026_v37, -inf  ;;  %v2952_v18 = vpack.c.bf16 %v2360_v44, %v2360_v44  ;;  %v2214_v46 = vmax.f32 %v2212_v29, %v2213_v53 }
 0x19e   : > { %v2361_v22 = vmax.f32 %v2253_v12, %v2309_v60  ;;  %v2362_v19 = vmax.f32 %v2260_v43, %v2316_v4  ;;  %v2354_v30 = vmax.f32 %v2148_v24, %v4215_v48  ;;  %v2945_v51 = vpack.c.bf16 %v2353_v14, %v2353_v14 }
 0x19f   : > { %v2267_v9 = vmax.f32 %v2265_v5, %v2266_v47  ;;  %v2221_v45 = vmax.f32 %v2219_v13, %v2220_v50  ;;  %v2355_v16 = vmax.f32 %v2155_v56, %v4223_v25  ;;  %v2227_v52 = vrot.slane %v2226_v39, 4 }
 0x1a0   : > { %v2953_v8 = vpack.c.bf16 %v2361_v22, %v2361_v22  ;;  %v2954_v21 = vpack.c.bf16 %v2362_v19, %v2362_v19  ;;  %v2944_v28 = vpack.c.bf16 %v2352_v62, %v2352_v62  ;;  %v2440_v36 = vunpack.c.l.b16 %v2952_v18 }
 0x1a1   : > { %v2363_v31 = vmax.f32 %v2267_v9, %v2323_v1  ;;  %v2234_v34 = vrot.slane %v2233_v3, 4  ;;  %v2215_v49 = vrot.slane %v2214_v46, 2  ;;  %v1887_v15 = vadd.f32 %v3333_v61, %v4190_v57 }
 0x1a2   : > { %v2441_v0 = vunpack.c.l.b16 %v2953_v8  ;;  %v2442_v7 = vunpack.c.l.b16 %v2954_v21  ;;  %v2946_v38 = vpack.c.bf16 %v2354_v30, %v2354_v30  ;;  %v2433_v48 = vunpack.c.l.b16 %v2945_v51 }
 0x1a3   : > { %v2222_v23 = vrot.slane %v2221_v45, 2  ;;  %v2228_v59 = vmax.f32 %v2226_v39, %v2227_v52  ;;  %v1902_v25 = vadd.f32 %v4126_v10, %v1887_v15  ;;  %v1896_v60 = vadd.f32 %v4126_v10, %v4193_v20 }
 0x1a4   : > { %v2462_v40 = vsel %vm2448_vm7, %v2441_v0, %v2440_v36  ;;  %v4251_v4 = vadd.f32 %v4134_v54, %v4187_v17  ;;  %v2432_v1 = vunpack.c.l.b16 %v2944_v28  ;;  %v2235_v57 = vmax.f32 %v2233_v3, %v2234_v34  ;;  %v1868_v36 = vpop.f32.mrf.mxu1 }
 0x1a5   : > { %v4254_v24 = vsel %vm2450_vm8, %v2442_v7, %v2462_v40  ;;  %v2947_v27 = vpack.c.bf16 %v2355_v16, %v2355_v16  ;;  %v2216_v32 = vmax.f32 %v2214_v46, %v2215_v49  ;;  %v1910_v26 = vmax.f32 %v1902_v25, 0.0 }
 0x1a6   : > { %v1904_v2 = vmax.f32 %v1896_v60, 0.0  ;;  %v2434_v56 = vunpack.c.l.b16 %v2946_v38  ;;  %v2449_v62 = vsel %vm2448_vm7, %v2433_v48, %v2432_v1  ;;  %v2955_v6 = vpack.c.bf16 %v2363_v31, %v2363_v31 }
 0x1a7   : > { %v2223_v33 = vmax.f32 %v2221_v45, %v2222_v23  ;;  %v2229_v20 = vrot.slane %v2228_v59, 2  ;;  %v3002_v54 = vpack.c.bf16 %v1910_v26, %v4161_v55  ;;  %v2078_v17 = vcombine.high %v1910_v26, %v1910_v26 }
 0x1a8   : > { %v2085_v14 = vrot.slane %v1910_v26, %v4136_v41  ;;  %v2236_v58 = vrot.slane %v2235_v57, 2  ;;  %v2987_v11 = vpack.c.bf16 %v1904_v2, %v4157_v63  ;;  %v1976_v35 = vcombine.high %v1904_v2, %v1904_v2 }
 0x1a9   : > { %v1983_v5 = vrot.slane %v1904_v2, %v4136_v41  ;;  %v2217_v37 = vrot.slane %v2216_v32, 1  ;;  %3009 = vst [vmem:[%s4213_s21 + $0x18] sm:$0xff] %v3002_v54   ;;  %v2092_v29 = vrot.slane %v2078_v17, %v4136_v41  ;;  %v2435_v47 = vunpack.c.l.b16 %v2947_v27 }
 0x1aa   : > { %v2093_v13 = vcombine.high %v2085_v14, %v2085_v14  ;;  %v2324_v12 = vsel %vm2127_vm6, %v2085_v14, -inf  ;;  %2988 = vst [vmem:[%s4213_s21] sm:$0xff] %v2987_v11   ;;  %v1990_v55 = vrot.slane %v1976_v35, %v4136_v41  ;;  %v2451_v63 = vsel %vm2450_vm8, %v2434_v56, %v2449_v62 }
 0x1ab   : > { %v2325_v43 = vrot.slane %v2324_v12, 4  ;;  %v1991_v44 = vcombine.high %v1983_v5, %v1983_v5  ;;  %v2156_v53 = vsel %vm2127_vm6, %v1983_v5, -inf  ;;  %v2443_v50 = vunpack.c.l.b16 %v2955_v6 }
 0x1ac   : > { %v2157_v39 = vrot.slane %v2156_v53, 4  ;;  %v2224_v3 = vrot.slane %v2223_v33, 1  ;;  %v2230_v22 = vmax.f32 %v2228_v59, %v2229_v20  ;;  %v2094_v19 = vcombine.high %v2092_v29, %v2092_v29 }
 0x1ad   : > { %v1992_v18 = vcombine.high %v1990_v55, %v1990_v55  ;;  %v2331_v46 = vsel %vm2127_vm6, %v2093_v13, -inf  ;;  %v2163_v51 = vsel %vm2127_vm6, %v1991_v44, -inf  ;;  %v2170_v9 = vsel %vm2127_vm6, %v1990_v55, -inf }
 0x1ae   : > { %v2158_v30 = vmax.f32 %v2156_v53, %v2157_v39  ;;  %v2218_v45 = vmax.f32 %v2216_v32, %v2217_v37  ;;  %v2237_v61 = vmax.f32 %v2235_v57, %v2236_v58  ;;  %v2326_v16 = vmax.f32 %v2324_v12, %v2325_v43 }
 0x1af   : > { %v2338_v8 = vsel %vm2127_vm6, %v2092_v29, -inf  ;;  %v2164_v52 = vrot.slane %v2163_v51, 4  ;;  %v2171_v28 = vrot.slane %v2170_v9, 4  ;;  %v2177_v31 = vsel %vm2127_vm6, %v1992_v18, -inf }
 0x1b0   : > { %v2159_v21 = vrot.slane %v2158_v30, 2  ;;  %v2225_v34 = vmax.f32 %v2223_v33, %v2224_v3  ;;  %v2231_v0 = vrot.slane %v2230_v22, 1  ;;  %v2332_v7 = vrot.slane %v2331_v46, 4 }
 0x1b1   : > { %v2345_v49 = vsel %vm2127_vm6, %v2094_v19, -inf  ;;  %v2165_v38 = vmax.f32 %v2163_v51, %v2164_v52  ;;  %v2172_v48 = vmax.f32 %v2170_v9, %v2171_v28  ;;  %v2178_v23 = vrot.slane %v2177_v31, 4 }
 0x1b2   : > { %v2160_v15 = vmax.f32 %v2158_v30, %v2159_v21  ;;  %v2238_v40 = vrot.slane %v2237_v61, 1  ;;  %v2327_v59 = vrot.slane %v2326_v16, 2  ;;  %v2339_v25 = vrot.slane %v2338_v8, 4 }
 0x1b3   : > { %v1885_v60 = vadd.f32 %v1868_v36, %v4251_v4  ;;  %v2166_v57 = vrot.slane %v2165_v38, 2  ;;  %v2173_v27 = vrot.slane %v2172_v48, 2  ;;  %v2179_v32 = vmax.f32 %v2177_v31, %v2178_v23 }
 0x1b4   : > { %v2161_v1 = vrot.slane %v2160_v15, 1  ;;  %v2232_v26 = vmax.f32 %v2230_v22, %v2231_v0  ;;  %v2333_v2 = vmax.f32 %v2331_v46, %v2332_v7  ;;  %v2346_v56 = vrot.slane %v2345_v49, 4 }
 0x1b5   : > { %v2453_v62 = vsel %vm2452_vm9, %v2435_v47, %v2451_v63  ;;  %v2167_v33 = vmax.f32 %v2165_v38, %v2166_v57  ;;  %v2174_v20 = vmax.f32 %v2172_v48, %v2173_v27  ;;  %v2180_v54 = vrot.slane %v2179_v32, 2 }
 0x1b6   : > { %v2162_v6 = vmax.f32 %v2160_v15, %v2161_v1  ;;  %v2239_v4 = vmax.f32 %v2237_v61, %v2238_v40  ;;  %v4283_v17 = vmax.f32 %v2326_v16, %v2327_v59  ;;  %v2340_v14 = vmax.f32 %v2338_v8, %v2339_v25 }
 0x1b7   : > { %v1900_v58 = vadd.f32 %v4126_v10, %v1885_v60  ;;  %v2168_v11 = vrot.slane %v2167_v33, 1  ;;  %v2175_v35 = vrot.slane %v2174_v20, 1  ;;  %v2181_v5 = vmax.f32 %v2179_v32, %v2180_v54 }
 0x1b8   : > { %v2356_v37 = vmax.f32 %v2162_v6, %v2218_v45  ;;  %v2334_v29 = vrot.slane %v2333_v2, 2  ;;  %v2347_v13 = vmax.f32 %v2345_v49, %v2346_v56  ;;  %v4288_v43 = vsel %vm2452_vm9, %v2443_v50, %v4254_v24 }
 0x1b9   : > { %v1908_v12 = vmax.f32 %v1900_v58, 0.0  ;;  %v2169_v55 = vmax.f32 %v2167_v33, %v2168_v11  ;;  %v2176_v10 = vmax.f32 %v2174_v20, %v2175_v35  ;;  %v2182_v44 = vrot.slane %v2181_v5, 1 }
 0x1ba   : > { %v2948_v53 = vpack.c.bf16 %v2356_v37, %v2356_v37  ;;  %v2341_v47 = vrot.slane %v2340_v14, 2  ;;  %v2348_v50 = vrot.slane %v2347_v13, 2 }
 0x1bb   : > { %v2997_v63 = vpack.c.bf16 %v1908_v12, %v4204_v42  ;;  %v2044_v39 = vcombine.high %v1908_v12, %v1908_v12  ;;  %v2051_v3 = vrot.slane %v1908_v12, %v4136_v41  ;;  %v2183_v22 = vmax.f32 %v2181_v5, %v2182_v44 }
 0x1bc   : > { %v2357_v19 = vmax.f32 %v2169_v55, %v2225_v34  ;;  %v2358_v18 = vmax.f32 %v2176_v10, %v2232_v26  ;;  %v2436_v24 = vunpack.c.l.b16 %v2948_v53  ;;  %v2342_v40 = vmax.f32 %v2340_v14, %v2341_v47 }
 0x1bd   : > { %3008 = vst [vmem:[%s4213_s21 + $0x10] sm:$0xff] %v2997_v63   ;;  %v2058_v46 = vrot.slane %v2044_v39, %v4136_v41  ;;  %v2059_v30 = vcombine.high %v2051_v3, %v2051_v3  ;;  %v2268_v51 = vsel %vm2127_vm6, %v2051_v3, -inf  ;;  %v2359_v9 = vmax.f32 %v2183_v22, %v2239_v4 }
 0x1be   : > { %v2949_v45 = vpack.c.bf16 %v2357_v19, %v2357_v19  ;;  %v2950_v61 = vpack.c.bf16 %v2358_v18, %v2358_v18  ;;  %v2455_v42 = vsel %vm2454_vm10, %v2436_v24, %v2453_v62  ;;  %v2269_v8 = vrot.slane %v2268_v51, 4 }
 0x1bf   : > { %v2060_v16 = vcombine.high %v2058_v46, %v2058_v46  ;;  %v2275_v21 = vsel %vm2127_vm6, %v2059_v30, -inf  ;;  %v2282_v52 = vsel %vm2127_vm6, %v2058_v46, -inf  ;;  %v2951_v28 = vpack.c.bf16 %v2359_v9, %v2359_v9 }
 0x1c0   : > { %v2437_v31 = vunpack.c.l.b16 %v2949_v45  ;;  %v2438_v36 = vunpack.c.l.b16 %v2950_v61  ;;  %v2276_v34 = vrot.slane %v2275_v21, 4  ;;  %v2335_v41 = vmax.f32 %v2333_v2, %v2334_v29 }
 0x1c1   : > { %v2270_v0 = vmax.f32 %v2268_v51, %v2269_v8  ;;  %v2283_v7 = vrot.slane %v2282_v52, 4  ;;  %v2289_v49 = vsel %vm2127_vm6, %v2060_v16, -inf  ;;  %v2439_v15 = vunpack.c.l.b16 %v2951_v28 }
 0x1c2   : > { %v2457_v38 = vsel %vm2456_vm11, %v2437_v31, %v2455_v42  ;;  %v2277_v48 = vmax.f32 %v2275_v21, %v2276_v34  ;;  %v2290_v23 = vrot.slane %v2289_v49, 4  ;;  %v2349_v1 = vmax.f32 %v2347_v13, %v2348_v50 }
 0x1c3   : > { %v2459_v59 = vsel %vm2458_vm12, %v2438_v36, %v2457_v38  ;;  %v2271_v25 = vrot.slane %v2270_v0, 2  ;;  %v2284_v60 = vmax.f32 %v2282_v52, %v2283_v7  ;;  %v2329_v26 = vrot.slane %v4283_v17, 1 }
 0x1c4   : > { %v2461_v57 = vsel %vm2460_vm13, %v2439_v15, %v2459_v59  ;;  %v2278_v27 = vrot.slane %v2277_v48, 2  ;;  %v2291_v32 = vmax.f32 %v2289_v49, %v2290_v23  ;;  %v2336_v6 = vrot.slane %v2335_v41, 1 }
 0x1c5   : > { %v2469_v2 = vpack.c.b16 %v2461_v57, %v2461_v57  ;;  %v2272_v56 = vmax.f32 %v2270_v0, %v2271_v25  ;;  %v2285_v62 = vrot.slane %v2284_v60, 2  ;;  %v2343_v54 = vrot.slane %v2342_v40, 1 }
 0x1c6   : > { %v2279_v33 = vmax.f32 %v2277_v48, %v2278_v27  ;;  %v2292_v20 = vrot.slane %v2291_v32, 2  ;;  %v2350_v58 = vrot.slane %v2349_v1, 1  ;;  %v2330_v5 = vmax.f32 %v4283_v17, %v2329_v26 }
 0x1c7   : > { %2473 = vst [vmem:[%s4309_s20] sm:$0xf] %v2469_v2  ;;  %v2273_v4 = vrot.slane %v2272_v56, 1  ;;  %v2286_v14 = vmax.f32 %v2284_v60, %v2285_v62  ;;  %v2337_v13 = vmax.f32 %v2335_v41, %v2336_v6  ;;  %v2344_v10 = vmax.f32 %v2342_v40, %v2343_v54 }
 0x1c8   : > { %v2280_v11 = vrot.slane %v2279_v33, 1  ;;  %v2293_v35 = vmax.f32 %v2291_v32, %v2292_v20  ;;  %v2351_v47 = vmax.f32 %v2349_v1, %v2350_v58 }
 0x1c9   : > { %v2274_v37 = vmax.f32 %v2272_v56, %v2273_v4  ;;  %v2287_v29 = vrot.slane %v2286_v14, 1 }
 0x1ca   : > { %v2281_v12 = vmax.f32 %v2279_v33, %v2280_v11  ;;  %v2294_v55 = vrot.slane %v2293_v35, 1 }
 0x1cb   : > { %v2288_v44 = vmax.f32 %v2286_v14, %v2287_v29  ;;  %v2364_v53 = vmax.f32 %v2274_v37, %v2330_v5 }
 0x1cc   : > { %v2295_v63 = vmax.f32 %v2293_v35, %v2294_v55  ;;  %v2365_v39 = vmax.f32 %v2281_v12, %v2337_v13 }
 0x1cd   : > { %v2366_v3 = vmax.f32 %v2288_v44, %v2344_v10  ;;  %v2956_v22 = vpack.c.bf16 %v2364_v53, %v2364_v53 }
 0x1ce   : > { %v2367_v19 = vmax.f32 %v2295_v63, %v2351_v47  ;;  %v2957_v18 = vpack.c.bf16 %v2365_v39, %v2365_v39 }
 0x1cf   : > { %v2958_v24 = vpack.c.bf16 %v2366_v3, %v2366_v3  ;;  %v2444_v50 = vunpack.c.l.b16 %v2956_v22 }
 0x1d0   : > { %v2959_v46 = vpack.c.bf16 %v2367_v19, %v2367_v19  ;;  %v2445_v17 = vunpack.c.l.b16 %v2957_v18 }
 0x1d1   : > { %v2446_v30 = vunpack.c.l.b16 %v2958_v24  ;;  %v2465_v51 = vsel %vm2454_vm10, %v2444_v50, %v4288_v43 }
 0x1d2   : > { %v2447_v9 = vunpack.c.l.b16 %v2959_v46  ;;  %v2466_v45 = vsel %vm2456_vm11, %v2445_v17, %v2465_v51 }
 0x1d3   : > { %v2467_v61 = vsel %vm2458_vm12, %v2446_v30, %v2466_v45 }
 0x1d4   : > { %v2468_v42 = vsel %vm2460_vm13, %v2447_v9, %v2467_v61 }
 0x1d5   : > { %v2470_v16 = vpack.c.b16 %v2468_v42, %v2468_v42 }
 0x1d7   : > { %2474 = vst [vmem:[%s4309_s20 + $0x4] sm:$0xf] %v2470_v16 }
 0x1d8 PF: > { %s19_s9 = sadd.s32 1, %s3501_s9   ;;  %s4351_s27 = smov %s3493_s29 }
 0x1d9   : > { %p16_p11 = scmp.ge.s32.totalorder %s19_s9, 10   ;;  %s4352_s28 = smov %s3497_s30 }
 0x1da   : > { %s4353_s29 = smov %s4356_s10  ;;  %s4354_s30 = smov %s4360_s11 }
 0x1db   :  { %18 = sbr.rel (!%p16_p11) target bundleno = 3 (0x3), region = 104 }

</bundles_post_ra>
